<compile_context>
chip_gen: v6e
topology: v6e:2x2x1
jax: 0.10.0
libtpu: 0.0.40
codegen_flags: <defaults>
</compile_context>

<pallas_src>
import numpy as np
import jax
import jax.numpy as jnp
from jax import lax
from jax.experimental import pallas as pl
from jax.experimental.pallas import tpu as pltpu


# ------------------------------ fused kernel --------------------------------

def make_fused_kernel(B, H, L, C, MOP):
    """B=seq len, H=hidden, L=#layers, C=#clusters, MOP=padded head width."""

    def kernel(*refs):
        pc_s, delta_s, clus_v, pc_proj, d_proj, whh0_t = refs[0:6]
        rest = refs[6:6 + 3 * (L - 1)]                 # (wih_t, whh_t, bias) l>=1
        base = 6 + 3 * (L - 1)
        h0_ref, c0_ref, wall_ref, ball_ref = refs[base:base + 4]
        lp_ref, st_ref = refs[base + 4:base + 6]
        y_sc = refs[base + 6]                          # (B, H) VMEM scratch

        # Hoist all weight loads out of the unrolled recurrence.
        whh = [whh0_t[...]] + [rest[3 * (l - 1) + 1][...] for l in range(1, L)]
        wih = [None] + [rest[3 * (l - 1) + 0][...] for l in range(1, L)]
        bia = [None] + [rest[3 * (l - 1) + 2][...] for l in range(1, L)]

        hs = [h0_ref[l] for l in range(L)]             # (1, H) each
        cs = [c0_ref[l] for l in range(L)]

        # Fully unrolled wavefront over (t, layer): layer-l step t depends only
        # on layer-(l-1) step t and layer-l step t-1, so layer-0 step t+1 can
        # overlap layer-1 step t in the issue schedule.
        for t in range(B):
            inp = None
            for l in range(L):
                if l == 0:
                    # pre-projected tables: gx0 = pc_proj[pc_t] + d_proj[d_t]
                    # (layer-0 bias already folded into pc_proj).
                    g = (pc_proj[pl.ds(pc_s[t], 1), :]
                         + d_proj[pl.ds(delta_s[t], 1), :]
                         + jnp.dot(hs[0], whh[0],
                                   preferred_element_type=jnp.float32))  # (1,4H)
                else:
                    g = (bia[l]
                         + jnp.dot(inp, wih[l],
                                   preferred_element_type=jnp.float32)
                         + jnp.dot(hs[l], whh[l],
                                   preferred_element_type=jnp.float32))  # (1,4H)
                s = jax.nn.sigmoid(g)                  # one full-4H EUP pass
                tg = jnp.tanh(g[:, 2 * H:3 * H])
                cs[l] = s[:, H:2 * H] * cs[l] + s[:, 0:H] * tg
                hs[l] = s[:, 3 * H:4 * H] * jnp.tanh(cs[l])
                inp = hs[l]
            y_sc[pl.ds(t, 1), :] = hs[L - 1]           # row store, off crit path

        # Lane-dense packed final state: [h_0..h_{L-1} | c_0..c_{L-1}].
        st_ref[...] = jnp.concatenate(hs + cs, axis=-1)          # (1, 2*L*H)

        # ---- cluster heads: one lane-dense matmul over all heads -----------
        y = y_sc[...]                                            # (B, H)
        logits_all = (jnp.dot(y, wall_ref[...],
                              preferred_element_type=jnp.float32)
                      + ball_ref[...])                           # (B, C*MOP)

        clus = clus_v[...]                                       # (B, 1) int32
        sel = jnp.zeros((B, MOP), jnp.float32)
        for c_idx in range(C):                                   # mask-select
            seg = logits_all[:, c_idx * MOP:(c_idx + 1) * MOP]
            sel = sel + jnp.where(clus == c_idx, seg, 0.0)

        m = jnp.max(sel, axis=-1, keepdims=True)
        lse = jnp.log(jnp.sum(jnp.exp(sel - m), axis=-1, keepdims=True)) + m
        lp_ref[...] = sel - lse                                  # dense (B,128)

    return kernel


def fused_forward_call(params, pc, delta, clusters, lstm_state):
    B = pc.shape[0]
    E = params['pc_embed'].shape[1]
    lstm_w = params['lstm']
    L = len(lstm_w)
    H = lstm_w[0][1].shape[0]
    C, _, MOP = params['head_w_t'].shape
    h0, c0 = lstm_state

    # Pre-project the embedding tables through the layer-0 input weights in the
    # wrapper (tiny XLA matmuls); fold the layer-0 bias into the pc table.
    wih0_t, whh0_t, b0 = lstm_w[0]
    pc_proj = jnp.dot(params['pc_embed'], wih0_t[0:E, :],
                      precision=lax.Precision.HIGHEST) + b0      # (num_pc, 4H)
    d_proj = jnp.dot(params['delta_embed'], wih0_t[E:2 * E, :],
                     precision=lax.Precision.HIGHEST)            # (num_id, 4H)

    smem = pl.BlockSpec(memory_space=pltpu.MemorySpace.SMEM)
    vmem = pl.BlockSpec(memory_space=pltpu.MemorySpace.VMEM)

    args = [pc.astype(jnp.int32), delta.astype(jnp.int32),
            clusters[:, None].astype(jnp.int32), pc_proj, d_proj, whh0_t]
    in_specs = [smem, smem, vmem, vmem, vmem, vmem]
    for (wih_t, whh_t, b) in lstm_w[1:]:
        args += [wih_t, whh_t, b]
        in_specs += [vmem, vmem, vmem]
    args += [h0, c0, params['head_w_all'], params['head_b_all']]
    in_specs += [vmem, vmem, vmem, vmem]

    logprob, st = pl.pallas_call(
        make_fused_kernel(B, H, L, C, MOP),
        out_shape=(jax.ShapeDtypeStruct((B, MOP), jnp.float32),
                   jax.ShapeDtypeStruct((1, 2 * L * H), jnp.float32)),
        in_specs=in_specs,
        out_specs=(vmem, vmem),
        scratch_shapes=[pltpu.VMEM((B, H), jnp.float32)],
    )(*args)

    hT = st[0, :L * H].reshape(L, 1, H)
    cT = st[0, L * H:].reshape(L, 1, H)
    return logprob, hT, cT


# ------------------------------- forward ------------------------------------

def clustering_lstm_forward(params, pc, delta, clusters, lstm_state,
                            target=None, num_pred=10):
    B = pc.shape[0]
    C = params['head_w_t'].shape[0]
    if 'num_valid' in params:
        # padded head columns carry -1e9 bias; top-k must stay within the
        # smallest cluster's valid width.
        assert num_pred <= min(params['num_valid'])

    logprob, hT, cT = fused_forward_call(params, pc, delta, clusters, lstm_state)
    state = (hT, cT)

    # TODO(synk): PyTorch-style in-kernel top-k has no clean Pallas primitive;
    # top-k selection (and the tiny per-cluster NLL-mean loss) stay in JAX glue.
    _, preds = lax.top_k(logprob, num_pred)            # same index set as torch.topk
    outputs = preds.astype(jnp.int32)

    if target is not None:
        lp_t = logprob[jnp.arange(B), target]          # (B,)
        member = (clusters[:, None] == jnp.arange(C)[None, :]).astype(jnp.float32)
        counts = member.sum(axis=0)                    # (C,)
        per_cluster = jnp.where(
            counts > 0,
            (-lp_t[:, None] * member).sum(axis=0) / jnp.maximum(counts, 1.0),
            0.0)
        loss = per_cluster.sum()                       # sum of per-cluster NLL means
    else:
        loss = jnp.float32(0.0)
    return loss, outputs, state


# --------------------------- parameter construction -------------------------

def init_params(key, num_pc, num_input_delta, num_output_delta,
                embed_dim, hidden_dim, num_layers=2):
    E, H = embed_dim, hidden_dim
    C = len(num_output_delta)
    MOP = ((max(num_output_delta) + 127) // 128) * 128   # lane-dense pad
    keys = jax.random.split(key, 2 + 4 * num_layers + 2 * C)
    kidx = 0

    def nxt(shape):
        nonlocal kidx
        k = keys[kidx]
        kidx += 1
        return jax.random.normal(k, shape, jnp.float32) * 0.1

    p = {}
    p['pc_embed'] = nxt((num_pc, E))
    p['delta_embed'] = nxt((num_input_delta, E))

    lstm = []
    d_in = 2 * E
    for _ in range(num_layers):
        wih = nxt((4 * H, d_in))
        whh = nxt((4 * H, H))
        bih = nxt((4 * H,))
        bhh = nxt((4 * H,))
        lstm.append((wih.T, whh.T, (bih + bhh)[None, :]))
        d_in = H
    p['lstm'] = lstm

    w_t = jnp.zeros((C, H, MOP), jnp.float32)
    b = jnp.full((C, 1, MOP), -1e9, jnp.float32)     # padded columns masked out
    for c, n_out in enumerate(num_output_delta):
        wc = nxt((n_out, H))
        bc = nxt((n_out,))
        w_t = w_t.at[c, :, :n_out].set(wc.T)
        b = b.at[c, 0, :n_out].set(bc)
    p['head_w_t'] = w_t                              # (C, H, MOP) — reference form
    p['head_b'] = b                                  # (C, 1, MOP)
    p['head_w_all'] = jnp.transpose(w_t, (1, 0, 2)).reshape(H, C * MOP)  # kernel form
    p['head_b_all'] = b.reshape(1, C * MOP)
    p['num_valid'] = tuple(num_output_delta)
    return p


# ----------------------------- pure-JAX reference ---------------------------

def ref_lstm_layer(x, wih_t, whh_t, b, h0, c0):
    H = whh_t.shape[0]

    def step(carry, xt):
        h, c = carry
        g = xt[None, :] @ wih_t + b + h @ whh_t
        i = jax.nn.sigmoid(g[:, :H])
        f = jax.nn.sigmoid(g[:, H:2 * H])
        gg = jnp.tanh(g[:, 2 * H:3 * H])
        o = jax.nn.sigmoid(g[:, 3 * H:])
        c = f * c + i * gg
        h = o * jnp.tanh(c)
        return (h, c), h[0]

    (h, c), ys = lax.scan(step, (h0, c0), x)
    return ys, h, c


def ref_forward(params, pc, delta, clusters, lstm_state, target, num_pred):
    B = pc.shape[0]
    C = params['head_w_t'].shape[0]
    x = jnp.concatenate([params['pc_embed'][pc], params['delta_embed'][delta]], -1)
    h0, c0 = lstm_state
    y = x
    hs, cs = [], []
    for l, (wih_t, whh_t, b) in enumerate(params['lstm']):
        y, h, c = ref_lstm_layer(y, wih_t, whh_t, b, h0[l], c0[l])
        hs.append(h)
        cs.append(c)
    logits = jnp.einsum('bh,bho->bo', y, params['head_w_t'][clusters]) \
        + params['head_b'][clusters, 0]
    logprob = jax.nn.log_softmax(logits, axis=-1)
    _, preds = lax.top_k(logprob, num_pred)
    lp_t = logprob[jnp.arange(B), target]
    member = (clusters[:, None] == jnp.arange(C)[None, :]).astype(jnp.float32)
    counts = member.sum(axis=0)
    per_cluster = jnp.where(counts > 0,
                            (-lp_t[:, None] * member).sum(axis=0)
                            / jnp.maximum(counts, 1.0), 0.0)
    state = (jnp.stack(hs, 0), jnp.stack(cs, 0))
    return per_cluster.sum(), preds.astype(jnp.int32), state


# ---------------------------------- main -------------------------------------

if __name__ == "__main__":
    num_pc, num_input_delta = 64, 64
    num_output_delta = (32, 48, 24)            # 3 cluster networks
    embed_dim, hidden_dim, num_layers = 16, 32, 2
    num_pred = 10
    B = 8

    key = jax.random.PRNGKey(0)
    k_param, k_pc, k_delta, k_tgt = jax.random.split(key, 4)
    params = init_params(k_param, num_pc, num_input_delta, num_output_delta,
                         embed_dim, hidden_dim, num_layers)

    pc = jax.random.randint(k_pc, (B,), 0, num_pc, jnp.int32)
    delta = jax.random.randint(k_delta, (B,), 0, num_input_delta, jnp.int32)
    clusters = jnp.array([0, 1, 2, 0, 1, 2, 1, 0], jnp.int32)
    target = jax.random.randint(k_tgt, (B,), 0, min(num_output_delta), jnp.int32)
    lstm_state = (jnp.zeros((num_layers, 1, hidden_dim), jnp.float32),
                  jnp.zeros((num_layers, 1, hidden_dim), jnp.float32))

    loss, outputs, state = clustering_lstm_forward(
        params, pc, delta, clusters, lstm_state, target=target, num_pred=num_pred)
    jax.block_until_ready((loss, outputs, state))

    # correctness check against a pure-JAX reference
    ref_loss, ref_outputs, ref_state = ref_forward(
        params, pc, delta, clusters, lstm_state, target, num_pred)
    np.testing.assert_allclose(np.asarray(loss), np.asarray(ref_loss),
                               rtol=1e-4, atol=1e-4)
    np.testing.assert_allclose(np.asarray(state[0]), np.asarray(ref_state[0]),
                               rtol=1e-4, atol=1e-4)
    np.testing.assert_allclose(np.asarray(state[1]), np.asarray(ref_state[1]),
                               rtol=1e-4, atol=1e-4)
    # topk is order-unspecified (torch sorted=False); compare the index sets
    np.testing.assert_array_equal(np.sort(np.asarray(outputs), axis=-1),
                                  np.sort(np.asarray(ref_outputs), axis=-1))

    print("KERNEL_OK")
</pallas_src>

<mosaic_0001>
module attributes {stable_mosaic.version = 11 : i64} {
  func.func @kernel(%arg0: memref<8xi32, #tpu.memory_space<smem>>, %arg1: memref<8xi32, #tpu.memory_space<smem>>, %arg2: memref<8x1xi32, #tpu.memory_space<vmem>>, %arg3: memref<64x128xf32, #tpu.memory_space<vmem>>, %arg4: memref<64x128xf32, #tpu.memory_space<vmem>>, %arg5: memref<32x128xf32, #tpu.memory_space<vmem>>, %arg6: memref<32x128xf32, #tpu.memory_space<vmem>>, %arg7: memref<32x128xf32, #tpu.memory_space<vmem>>, %arg8: memref<1x128xf32, #tpu.memory_space<vmem>>, %arg9: memref<2x1x32xf32, #tpu.memory_space<vmem>>, %arg10: memref<2x1x32xf32, #tpu.memory_space<vmem>>, %arg11: memref<32x384xf32, #tpu.memory_space<vmem>>, %arg12: memref<1x384xf32, #tpu.memory_space<vmem>>, %arg13: memref<8x128xf32, #tpu.memory_space<vmem>>, %arg14: memref<1x128xf32, #tpu.memory_space<vmem>>, %arg15: memref<8x32xf32, #tpu.memory_space<vmem>>) attributes {dimension_semantics = [], scalar_prefetch = 0 : i64, scratch_operands = 1 : i64, tpu.core_type = #tpu.core_type<tc>} {
    %c0 = arith.constant 0 : index
    %c0_0 = arith.constant 0 : index
    %0 = vector.load %arg5[%c0, %c0_0] : memref<32x128xf32, #tpu.memory_space<vmem>>, vector<32x128xf32>
    %c0_1 = arith.constant 0 : index
    %c0_2 = arith.constant 0 : index
    %1 = vector.load %arg7[%c0_1, %c0_2] : memref<32x128xf32, #tpu.memory_space<vmem>>, vector<32x128xf32>
    %c0_3 = arith.constant 0 : index
    %c0_4 = arith.constant 0 : index
    %2 = vector.load %arg6[%c0_3, %c0_4] : memref<32x128xf32, #tpu.memory_space<vmem>>, vector<32x128xf32>
    %c0_5 = arith.constant 0 : index
    %c0_6 = arith.constant 0 : index
    %3 = vector.load %arg8[%c0_5, %c0_6] : memref<1x128xf32, #tpu.memory_space<vmem>>, vector<1x128xf32>
    %c0_7 = arith.constant 0 : index
    %c0_8 = arith.constant 0 : index
    %c0_9 = arith.constant 0 : index
    %4 = vector.load %arg9[%c0_7, %c0_8, %c0_9] : memref<2x1x32xf32, #tpu.memory_space<vmem>>, vector<1x1x32xf32>
    %5 = vector.shape_cast %4 : vector<1x1x32xf32> to vector<1x32xf32>
    %c1 = arith.constant 1 : index
    %c0_10 = arith.constant 0 : index
    %c0_11 = arith.constant 0 : index
    %6 = vector.load %arg9[%c1, %c0_10, %c0_11] : memref<2x1x32xf32, #tpu.memory_space<vmem>>, vector<1x1x32xf32>
    %7 = vector.shape_cast %6 : vector<1x1x32xf32> to vector<1x32xf32>
    %c0_12 = arith.constant 0 : index
    %c0_13 = arith.constant 0 : index
    %c0_14 = arith.constant 0 : index
    %8 = vector.load %arg10[%c0_12, %c0_13, %c0_14] : memref<2x1x32xf32, #tpu.memory_space<vmem>>, vector<1x1x32xf32>
    %9 = vector.shape_cast %8 : vector<1x1x32xf32> to vector<1x32xf32>
    %c1_15 = arith.constant 1 : index
    %c0_16 = arith.constant 0 : index
    %c0_17 = arith.constant 0 : index
    %10 = vector.load %arg10[%c1_15, %c0_16, %c0_17] : memref<2x1x32xf32, #tpu.memory_space<vmem>>, vector<1x1x32xf32>
    %11 = vector.shape_cast %10 : vector<1x1x32xf32> to vector<1x32xf32>
    %c0_18 = arith.constant 0 : index
    %12 = memref.load %arg0[%c0_18] : memref<8xi32, #tpu.memory_space<smem>>
    %13 = arith.index_cast %12 : i32 to index
    %c0_19 = arith.constant 0 : index
    %14 = vector.load %arg3[%13, %c0_19] : memref<64x128xf32, #tpu.memory_space<vmem>>, vector<1x128xf32>
    %c0_20 = arith.constant 0 : index
    %15 = memref.load %arg1[%c0_20] : memref<8xi32, #tpu.memory_space<smem>>
    %16 = arith.index_cast %15 : i32 to index
    %c0_21 = arith.constant 0 : index
    %17 = vector.load %arg4[%16, %c0_21] : memref<64x128xf32, #tpu.memory_space<vmem>>, vector<1x128xf32>
    %18 = arith.addf %14, %17 : vector<1x128xf32>
    %cst = arith.constant dense<0.000000e+00> : vector<1x128xf32>
    %19 = tpu.matmul %5, %0, %cst {dimension_numbers = #tpu.dot_dimension_numbers<[1], [0], [0], [1], [0, 0, 1, 1], [], []>} : vector<1x32xf32>, vector<32x128xf32>, vector<1x128xf32> -> vector<1x128xf32>
    %20 = arith.addf %18, %19 : vector<1x128xf32>
    %21 = arith.negf %20 : vector<1x128xf32>
    %22 = math.exp %21 : vector<1x128xf32>
    %cst_22 = arith.constant 1.000000e+00 : f32
    %23 = vector.broadcast %cst_22 : f32 to vector<1x128xf32>
    %24 = arith.addf %23, %22 : vector<1x128xf32>
    %25 = arith.divf %23, %24 : vector<1x128xf32>
    %26 = vector.extract_strided_slice %20 {offsets = [0, 64], sizes = [1, 32], strides = [1, 1]} : vector<1x128xf32> to vector<1x32xf32>
    %27 = math.tanh %26 : vector<1x32xf32>
    %28 = vector.extract_strided_slice %25 {offsets = [0, 32], sizes = [1, 32], strides = [1, 1]} : vector<1x128xf32> to vector<1x32xf32>
    %29 = arith.mulf %28, %9 : vector<1x32xf32>
    %30 = vector.extract_strided_slice %25 {offsets = [0, 0], sizes = [1, 32], strides = [1, 1]} : vector<1x128xf32> to vector<1x32xf32>
    %31 = arith.mulf %30, %27 : vector<1x32xf32>
    %32 = arith.addf %29, %31 : vector<1x32xf32>
    %33 = vector.extract_strided_slice %25 {offsets = [0, 96], sizes = [1, 32], strides = [1, 1]} : vector<1x128xf32> to vector<1x32xf32>
    %34 = math.tanh %32 : vector<1x32xf32>
    %35 = arith.mulf %33, %34 : vector<1x32xf32>
    %cst_23 = arith.constant dense<0.000000e+00> : vector<1x128xf32>
    %36 = tpu.matmul %35, %2, %cst_23 {dimension_numbers = #tpu.dot_dimension_numbers<[1], [0], [0], [1], [0, 0, 1, 1], [], []>} : vector<1x32xf32>, vector<32x128xf32>, vector<1x128xf32> -> vector<1x128xf32>
    %37 = arith.addf %3, %36 : vector<1x128xf32>
    %cst_24 = arith.constant dense<0.000000e+00> : vector<1x128xf32>
    %38 = tpu.matmul %7, %1, %cst_24 {dimension_numbers = #tpu.dot_dimension_numbers<[1], [0], [0], [1], [0, 0, 1, 1], [], []>} : vector<1x32xf32>, vector<32x128xf32>, vector<1x128xf32> -> vector<1x128xf32>
    %39 = arith.addf %37, %38 : vector<1x128xf32>
    %40 = arith.negf %39 : vector<1x128xf32>
    %41 = math.exp %40 : vector<1x128xf32>
    %cst_25 = arith.constant 1.000000e+00 : f32
    %42 = vector.broadcast %cst_25 : f32 to vector<1x128xf32>
    %43 = arith.addf %42, %41 : vector<1x128xf32>
    %44 = arith.divf %42, %43 : vector<1x128xf32>
    %45 = vector.extract_strided_slice %39 {offsets = [0, 64], sizes = [1, 32], strides = [1, 1]} : vector<1x128xf32> to vector<1x32xf32>
    %46 = math.tanh %45 : vector<1x32xf32>
    %47 = vector.extract_strided_slice %44 {offsets = [0, 32], sizes = [1, 32], strides = [1, 1]} : vector<1x128xf32> to vector<1x32xf32>
    %48 = arith.mulf %47, %11 : vector<1x32xf32>
    %49 = vector.extract_strided_slice %44 {offsets = [0, 0], sizes = [1, 32], strides = [1, 1]} : vector<1x128xf32> to vector<1x32xf32>
    %50 = arith.mulf %49, %46 : vector<1x32xf32>
    %51 = arith.addf %48, %50 : vector<1x32xf32>
    %52 = vector.extract_strided_slice %44 {offsets = [0, 96], sizes = [1, 32], strides = [1, 1]} : vector<1x128xf32> to vector<1x32xf32>
    %53 = math.tanh %51 : vector<1x32xf32>
    %54 = arith.mulf %52, %53 : vector<1x32xf32>
    %c0_26 = arith.constant 0 : index
    %c0_27 = arith.constant 0 : index
    %55 = vector.load %arg15[%c0_26, %c0_27] : memref<8x32xf32, #tpu.memory_space<vmem>>, vector<1x32xf32>
    tpu.vector_store %arg15[%c0_26, %c0_27], %54 {strides = array<i32>} : memref<8x32xf32, #tpu.memory_space<vmem>>, vector<1x32xf32>,
    %c1_28 = arith.constant 1 : index
    %56 = memref.load %arg0[%c1_28] : memref<8xi32, #tpu.memory_space<smem>>
    %57 = arith.index_cast %56 : i32 to index
    %c0_29 = arith.constant 0 : index
    %58 = vector.load %arg3[%57, %c0_29] : memref<64x128xf32, #tpu.memory_space<vmem>>, vector<1x128xf32>
    %c1_30 = arith.constant 1 : index
    %59 = memref.load %arg1[%c1_30] : memref<8xi32, #tpu.memory_space<smem>>
    %60 = arith.index_cast %59 : i32 to index
    %c0_31 = arith.constant 0 : index
    %61 = vector.load %arg4[%60, %c0_31] : memref<64x128xf32, #tpu.memory_space<vmem>>, vector<1x128xf32>
    %62 = arith.addf %58, %61 : vector<1x128xf32>
    %cst_32 = arith.constant dense<0.000000e+00> : vector<1x128xf32>
    %63 = tpu.matmul %35, %0, %cst_32 {dimension_numbers = #tpu.dot_dimension_numbers<[1], [0], [0], [1], [0, 0, 1, 1], [], []>} : vector<1x32xf32>, vector<32x128xf32>, vector<1x128xf32> -> vector<1x128xf32>
    %64 = arith.addf %62, %63 : vector<1x128xf32>
    %65 = arith.negf %64 : vector<1x128xf32>
    %66 = math.exp %65 : vector<1x128xf32>
    %cst_33 = arith.constant 1.000000e+00 : f32
    %67 = vector.broadcast %cst_33 : f32 to vector<1x128xf32>
    %68 = arith.addf %67, %66 : vector<1x128xf32>
    %69 = arith.divf %67, %68 : vector<1x128xf32>
    %70 = vector.extract_strided_slice %64 {offsets = [0, 64], sizes = [1, 32], strides = [1, 1]} : vector<1x128xf32> to vector<1x32xf32>
    %71 = math.tanh %70 : vector<1x32xf32>
    %72 = vector.extract_strided_slice %69 {offsets = [0, 32], sizes = [1, 32], strides = [1, 1]} : vector<1x128xf32> to vector<1x32xf32>
    %73 = arith.mulf %72, %32 : vector<1x32xf32>
    %74 = vector.extract_strided_slice %69 {offsets = [0, 0], sizes = [1, 32], strides = [1, 1]} : vector<1x128xf32> to vector<1x32xf32>
    %75 = arith.mulf %74, %71 : vector<1x32xf32>
    %76 = arith.addf %73, %75 : vector<1x32xf32>
    %77 = vector.extract_strided_slice %69 {offsets = [0, 96], sizes = [1, 32], strides = [1, 1]} : vector<1x128xf32> to vector<1x32xf32>
    %78 = math.tanh %76 : vector<1x32xf32>
    %79 = arith.mulf %77, %78 : vector<1x32xf32>
    %cst_34 = arith.constant dense<0.000000e+00> : vector<1x128xf32>
    %80 = tpu.matmul %79, %2, %cst_34 {dimension_numbers = #tpu.dot_dimension_numbers<[1], [0], [0], [1], [0, 0, 1, 1], [], []>} : vector<1x32xf32>, vector<32x128xf32>, vector<1x128xf32> -> vector<1x128xf32>
    %81 = arith.addf %3, %80 : vector<1x128xf32>
    %cst_35 = arith.constant dense<0.000000e+00> : vector<1x128xf32>
    %82 = tpu.matmul %54, %1, %cst_35 {dimension_numbers = #tpu.dot_dimension_numbers<[1], [0], [0], [1], [0, 0, 1, 1], [], []>} : vector<1x32xf32>, vector<32x128xf32>, vector<1x128xf32> -> vector<1x128xf32>
    %83 = arith.addf %81, %82 : vector<1x128xf32>
    %84 = arith.negf %83 : vector<1x128xf32>
    %85 = math.exp %84 : vector<1x128xf32>
    %cst_36 = arith.constant 1.000000e+00 : f32
    %86 = vector.broadcast %cst_36 : f32 to vector<1x128xf32>
    %87 = arith.addf %86, %85 : vector<1x128xf32>
    %88 = arith.divf %86, %87 : vector<1x128xf32>
    %89 = vector.extract_strided_slice %83 {offsets = [0, 64], sizes = [1, 32], strides = [1, 1]} : vector<1x128xf32> to vector<1x32xf32>
    %90 = math.tanh %89 : vector<1x32xf32>
    %91 = vector.extract_strided_slice %88 {offsets = [0, 32], sizes = [1, 32], strides = [1, 1]} : vector<1x128xf32> to vector<1x32xf32>
    %92 = arith.mulf %91, %51 : vector<1x32xf32>
    %93 = vector.extract_strided_slice %88 {offsets = [0, 0], sizes = [1, 32], strides = [1, 1]} : vector<1x128xf32> to vector<1x32xf32>
    %94 = arith.mulf %93, %90 : vector<1x32xf32>
    %95 = arith.addf %92, %94 : vector<1x32xf32>
    %96 = vector.extract_strided_slice %88 {offsets = [0, 96], sizes = [1, 32], strides = [1, 1]} : vector<1x128xf32> to vector<1x32xf32>
    %97 = math.tanh %95 : vector<1x32xf32>
    %98 = arith.mulf %96, %97 : vector<1x32xf32>
    %c1_37 = arith.constant 1 : index
    %c0_38 = arith.constant 0 : index
    %99 = vector.load %arg15[%c1_37, %c0_38] : memref<8x32xf32, #tpu.memory_space<vmem>>, vector<1x32xf32>
    tpu.vector_store %arg15[%c1_37, %c0_38], %98 {strides = array<i32>} : memref<8x32xf32, #tpu.memory_space<vmem>>, vector<1x32xf32>,
    %c2 = arith.constant 2 : index
    %100 = memref.load %arg0[%c2] : memref<8xi32, #tpu.memory_space<smem>>
    %101 = arith.index_cast %100 : i32 to index
    %c0_39 = arith.constant 0 : index
    %102 = vector.load %arg3[%101, %c0_39] : memref<64x128xf32, #tpu.memory_space<vmem>>, vector<1x128xf32>
    %c2_40 = arith.constant 2 : index
    %103 = memref.load %arg1[%c2_40] : memref<8xi32, #tpu.memory_space<smem>>
    %104 = arith.index_cast %103 : i32 to index
    %c0_41 = arith.constant 0 : index
    %105 = vector.load %arg4[%104, %c0_41] : memref<64x128xf32, #tpu.memory_space<vmem>>, vector<1x128xf32>
    %106 = arith.addf %102, %105 : vector<1x128xf32>
    %cst_42 = arith.constant dense<0.000000e+00> : vector<1x128xf32>
    %107 = tpu.matmul %79, %0, %cst_42 {dimension_numbers = #tpu.dot_dimension_numbers<[1], [0], [0], [1], [0, 0, 1, 1], [], []>} : vector<1x32xf32>, vector<32x128xf32>, vector<1x128xf32> -> vector<1x128xf32>
    %108 = arith.addf %106, %107 : vector<1x128xf32>
    %109 = arith.negf %108 : vector<1x128xf32>
    %110 = math.exp %109 : vector<1x128xf32>
    %cst_43 = arith.constant 1.000000e+00 : f32
    %111 = vector.broadcast %cst_43 : f32 to vector<1x128xf32>
    %112 = arith.addf %111, %110 : vector<1x128xf32>
    %113 = arith.divf %111, %112 : vector<1x128xf32>
    %114 = vector.extract_strided_slice %108 {offsets = [0, 64], sizes = [1, 32], strides = [1, 1]} : vector<1x128xf32> to vector<1x32xf32>
    %115 = math.tanh %114 : vector<1x32xf32>
    %116 = vector.extract_strided_slice %113 {offsets = [0, 32], sizes = [1, 32], strides = [1, 1]} : vector<1x128xf32> to vector<1x32xf32>
    %117 = arith.mulf %116, %76 : vector<1x32xf32>
    %118 = vector.extract_strided_slice %113 {offsets = [0, 0], sizes = [1, 32], strides = [1, 1]} : vector<1x128xf32> to vector<1x32xf32>
    %119 = arith.mulf %118, %115 : vector<1x32xf32>
    %120 = arith.addf %117, %119 : vector<1x32xf32>
    %121 = vector.extract_strided_slice %113 {offsets = [0, 96], sizes = [1, 32], strides = [1, 1]} : vector<1x128xf32> to vector<1x32xf32>
    %122 = math.tanh %120 : vector<1x32xf32>
    %123 = arith.mulf %121, %122 : vector<1x32xf32>
    %cst_44 = arith.constant dense<0.000000e+00> : vector<1x128xf32>
    %124 = tpu.matmul %123, %2, %cst_44 {dimension_numbers = #tpu.dot_dimension_numbers<[1], [0], [0], [1], [0, 0, 1, 1], [], []>} : vector<1x32xf32>, vector<32x128xf32>, vector<1x128xf32> -> vector<1x128xf32>
    %125 = arith.addf %3, %124 : vector<1x128xf32>
    %cst_45 = arith.constant dense<0.000000e+00> : vector<1x128xf32>
    %126 = tpu.matmul %98, %1, %cst_45 {dimension_numbers = #tpu.dot_dimension_numbers<[1], [0], [0], [1], [0, 0, 1, 1], [], []>} : vector<1x32xf32>, vector<32x128xf32>, vector<1x128xf32> -> vector<1x128xf32>
    %127 = arith.addf %125, %126 : vector<1x128xf32>
    %128 = arith.negf %127 : vector<1x128xf32>
    %129 = math.exp %128 : vector<1x128xf32>
    %cst_46 = arith.constant 1.000000e+00 : f32
    %130 = vector.broadcast %cst_46 : f32 to vector<1x128xf32>
    %131 = arith.addf %130, %129 : vector<1x128xf32>
    %132 = arith.divf %130, %131 : vector<1x128xf32>
    %133 = vector.extract_strided_slice %127 {offsets = [0, 64], sizes = [1, 32], strides = [1, 1]} : vector<1x128xf32> to vector<1x32xf32>
    %134 = math.tanh %133 : vector<1x32xf32>
    %135 = vector.extract_strided_slice %132 {offsets = [0, 32], sizes = [1, 32], strides = [1, 1]} : vector<1x128xf32> to vector<1x32xf32>
    %136 = arith.mulf %135, %95 : vector<1x32xf32>
    %137 = vector.extract_strided_slice %132 {offsets = [0, 0], sizes = [1, 32], strides = [1, 1]} : vector<1x128xf32> to vector<1x32xf32>
    %138 = arith.mulf %137, %134 : vector<1x32xf32>
    %139 = arith.addf %136, %138 : vector<1x32xf32>
    %140 = vector.extract_strided_slice %132 {offsets = [0, 96], sizes = [1, 32], strides = [1, 1]} : vector<1x128xf32> to vector<1x32xf32>
    %141 = math.tanh %139 : vector<1x32xf32>
    %142 = arith.mulf %140, %141 : vector<1x32xf32>
    %c2_47 = arith.constant 2 : index
    %c0_48 = arith.constant 0 : index
    %143 = vector.load %arg15[%c2_47, %c0_48] : memref<8x32xf32, #tpu.memory_space<vmem>>, vector<1x32xf32>
    tpu.vector_store %arg15[%c2_47, %c0_48], %142 {strides = array<i32>} : memref<8x32xf32, #tpu.memory_space<vmem>>, vector<1x32xf32>,
    %c3 = arith.constant 3 : index
    %144 = memref.load %arg0[%c3] : memref<8xi32, #tpu.memory_space<smem>>
    %145 = arith.index_cast %144 : i32 to index
    %c0_49 = arith.constant 0 : index
    %146 = vector.load %arg3[%145, %c0_49] : memref<64x128xf32, #tpu.memory_space<vmem>>, vector<1x128xf32>
    %c3_50 = arith.constant 3 : index
    %147 = memref.load %arg1[%c3_50] : memref<8xi32, #tpu.memory_space<smem>>
    %148 = arith.index_cast %147 : i32 to index
    %c0_51 = arith.constant 0 : index
    %149 = vector.load %arg4[%148, %c0_51] : memref<64x128xf32, #tpu.memory_space<vmem>>, vector<1x128xf32>
    %150 = arith.addf %146, %149 : vector<1x128xf32>
    %cst_52 = arith.constant dense<0.000000e+00> : vector<1x128xf32>
    %151 = tpu.matmul %123, %0, %cst_52 {dimension_numbers = #tpu.dot_dimension_numbers<[1], [0], [0], [1], [0, 0, 1, 1], [], []>} : vector<1x32xf32>, vector<32x128xf32>, vector<1x128xf32> -> vector<1x128xf32>
    %152 = arith.addf %150, %151 : vector<1x128xf32>
    %153 = arith.negf %152 : vector<1x128xf32>
    %154 = math.exp %153 : vector<1x128xf32>
    %cst_53 = arith.constant 1.000000e+00 : f32
    %155 = vector.broadcast %cst_53 : f32 to vector<1x128xf32>
    %156 = arith.addf %155, %154 : vector<1x128xf32>
    %157 = arith.divf %155, %156 : vector<1x128xf32>
    %158 = vector.extract_strided_slice %152 {offsets = [0, 64], sizes = [1, 32], strides = [1, 1]} : vector<1x128xf32> to vector<1x32xf32>
    %159 = math.tanh %158 : vector<1x32xf32>
    %160 = vector.extract_strided_slice %157 {offsets = [0, 32], sizes = [1, 32], strides = [1, 1]} : vector<1x128xf32> to vector<1x32xf32>
    %161 = arith.mulf %160, %120 : vector<1x32xf32>
    %162 = vector.extract_strided_slice %157 {offsets = [0, 0], sizes = [1, 32], strides = [1, 1]} : vector<1x128xf32> to vector<1x32xf32>
    %163 = arith.mulf %162, %159 : vector<1x32xf32>
    %164 = arith.addf %161, %163 : vector<1x32xf32>
    %165 = vector.extract_strided_slice %157 {offsets = [0, 96], sizes = [1, 32], strides = [1, 1]} : vector<1x128xf32> to vector<1x32xf32>
    %166 = math.tanh %164 : vector<1x32xf32>
    %167 = arith.mulf %165, %166 : vector<1x32xf32>
    %cst_54 = arith.constant dense<0.000000e+00> : vector<1x128xf32>
    %168 = tpu.matmul %167, %2, %cst_54 {dimension_numbers = #tpu.dot_dimension_numbers<[1], [0], [0], [1], [0, 0, 1, 1], [], []>} : vector<1x32xf32>, vector<32x128xf32>, vector<1x128xf32> -> vector<1x128xf32>
    %169 = arith.addf %3, %168 : vector<1x128xf32>
    %cst_55 = arith.constant dense<0.000000e+00> : vector<1x128xf32>
    %170 = tpu.matmul %142, %1, %cst_55 {dimension_numbers = #tpu.dot_dimension_numbers<[1], [0], [0], [1], [0, 0, 1, 1], [], []>} : vector<1x32xf32>, vector<32x128xf32>, vector<1x128xf32> -> vector<1x128xf32>
    %171 = arith.addf %169, %170 : vector<1x128xf32>
    %172 = arith.negf %171 : vector<1x128xf32>
    %173 = math.exp %172 : vector<1x128xf32>
    %cst_56 = arith.constant 1.000000e+00 : f32
    %174 = vector.broadcast %cst_56 : f32 to vector<1x128xf32>
    %175 = arith.addf %174, %173 : vector<1x128xf32>
    %176 = arith.divf %174, %175 : vector<1x128xf32>
    %177 = vector.extract_strided_slice %171 {offsets = [0, 64], sizes = [1, 32], strides = [1, 1]} : vector<1x128xf32> to vector<1x32xf32>
    %178 = math.tanh %177 : vector<1x32xf32>
    %179 = vector.extract_strided_slice %176 {offsets = [0, 32], sizes = [1, 32], strides = [1, 1]} : vector<1x128xf32> to vector<1x32xf32>
    %180 = arith.mulf %179, %139 : vector<1x32xf32>
    %181 = vector.extract_strided_slice %176 {offsets = [0, 0], sizes = [1, 32], strides = [1, 1]} : vector<1x128xf32> to vector<1x32xf32>
    %182 = arith.mulf %181, %178 : vector<1x32xf32>
    %183 = arith.addf %180, %182 : vector<1x32xf32>
    %184 = vector.extract_strided_slice %176 {offsets = [0, 96], sizes = [1, 32], strides = [1, 1]} : vector<1x128xf32> to vector<1x32xf32>
    %185 = math.tanh %183 : vector<1x32xf32>
    %186 = arith.mulf %184, %185 : vector<1x32xf32>
    %c3_57 = arith.constant 3 : index
    %c0_58 = arith.constant 0 : index
    %187 = vector.load %arg15[%c3_57, %c0_58] : memref<8x32xf32, #tpu.memory_space<vmem>>, vector<1x32xf32>
    tpu.vector_store %arg15[%c3_57, %c0_58], %186 {strides = array<i32>} : memref<8x32xf32, #tpu.memory_space<vmem>>, vector<1x32xf32>,
    %c4 = arith.constant 4 : index
    %188 = memref.load %arg0[%c4] : memref<8xi32, #tpu.memory_space<smem>>
    %189 = arith.index_cast %188 : i32 to index
    %c0_59 = arith.constant 0 : index
    %190 = vector.load %arg3[%189, %c0_59] : memref<64x128xf32, #tpu.memory_space<vmem>>, vector<1x128xf32>
    %c4_60 = arith.constant 4 : index
    %191 = memref.load %arg1[%c4_60] : memref<8xi32, #tpu.memory_space<smem>>
    %192 = arith.index_cast %191 : i32 to index
    %c0_61 = arith.constant 0 : index
    %193 = vector.load %arg4[%192, %c0_61] : memref<64x128xf32, #tpu.memory_space<vmem>>, vector<1x128xf32>
    %194 = arith.addf %190, %193 : vector<1x128xf32>
    %cst_62 = arith.constant dense<0.000000e+00> : vector<1x128xf32>
    %195 = tpu.matmul %167, %0, %cst_62 {dimension_numbers = #tpu.dot_dimension_numbers<[1], [0], [0], [1], [0, 0, 1, 1], [], []>} : vector<1x32xf32>, vector<32x128xf32>, vector<1x128xf32> -> vector<1x128xf32>
    %196 = arith.addf %194, %195 : vector<1x128xf32>
    %197 = arith.negf %196 : vector<1x128xf32>
    %198 = math.exp %197 : vector<1x128xf32>
    %cst_63 = arith.constant 1.000000e+00 : f32
    %199 = vector.broadcast %cst_63 : f32 to vector<1x128xf32>
    %200 = arith.addf %199, %198 : vector<1x128xf32>
    %201 = arith.divf %199, %200 : vector<1x128xf32>
    %202 = vector.extract_strided_slice %196 {offsets = [0, 64], sizes = [1, 32], strides = [1, 1]} : vector<1x128xf32> to vector<1x32xf32>
    %203 = math.tanh %202 : vector<1x32xf32>
    %204 = vector.extract_strided_slice %201 {offsets = [0, 32], sizes = [1, 32], strides = [1, 1]} : vector<1x128xf32> to vector<1x32xf32>
    %205 = arith.mulf %204, %164 : vector<1x32xf32>
    %206 = vector.extract_strided_slice %201 {offsets = [0, 0], sizes = [1, 32], strides = [1, 1]} : vector<1x128xf32> to vector<1x32xf32>
    %207 = arith.mulf %206, %203 : vector<1x32xf32>
    %208 = arith.addf %205, %207 : vector<1x32xf32>
    %209 = vector.extract_strided_slice %201 {offsets = [0, 96], sizes = [1, 32], strides = [1, 1]} : vector<1x128xf32> to vector<1x32xf32>
    %210 = math.tanh %208 : vector<1x32xf32>
    %211 = arith.mulf %209, %210 : vector<1x32xf32>
    %cst_64 = arith.constant dense<0.000000e+00> : vector<1x128xf32>
    %212 = tpu.matmul %211, %2, %cst_64 {dimension_numbers = #tpu.dot_dimension_numbers<[1], [0], [0], [1], [0, 0, 1, 1], [], []>} : vector<1x32xf32>, vector<32x128xf32>, vector<1x128xf32> -> vector<1x128xf32>
    %213 = arith.addf %3, %212 : vector<1x128xf32>
    %cst_65 = arith.constant dense<0.000000e+00> : vector<1x128xf32>
    %214 = tpu.matmul %186, %1, %cst_65 {dimension_numbers = #tpu.dot_dimension_numbers<[1], [0], [0], [1], [0, 0, 1, 1], [], []>} : vector<1x32xf32>, vector<32x128xf32>, vector<1x128xf32> -> vector<1x128xf32>
    %215 = arith.addf %213, %214 : vector<1x128xf32>
    %216 = arith.negf %215 : vector<1x128xf32>
    %217 = math.exp %216 : vector<1x128xf32>
    %cst_66 = arith.constant 1.000000e+00 : f32
    %218 = vector.broadcast %cst_66 : f32 to vector<1x128xf32>
    %219 = arith.addf %218, %217 : vector<1x128xf32>
    %220 = arith.divf %218, %219 : vector<1x128xf32>
    %221 = vector.extract_strided_slice %215 {offsets = [0, 64], sizes = [1, 32], strides = [1, 1]} : vector<1x128xf32> to vector<1x32xf32>
    %222 = math.tanh %221 : vector<1x32xf32>
    %223 = vector.extract_strided_slice %220 {offsets = [0, 32], sizes = [1, 32], strides = [1, 1]} : vector<1x128xf32> to vector<1x32xf32>
    %224 = arith.mulf %223, %183 : vector<1x32xf32>
    %225 = vector.extract_strided_slice %220 {offsets = [0, 0], sizes = [1, 32], strides = [1, 1]} : vector<1x128xf32> to vector<1x32xf32>
    %226 = arith.mulf %225, %222 : vector<1x32xf32>
    %227 = arith.addf %224, %226 : vector<1x32xf32>
    %228 = vector.extract_strided_slice %220 {offsets = [0, 96], sizes = [1, 32], strides = [1, 1]} : vector<1x128xf32> to vector<1x32xf32>
    %229 = math.tanh %227 : vector<1x32xf32>
    %230 = arith.mulf %228, %229 : vector<1x32xf32>
    %c4_67 = arith.constant 4 : index
    %c0_68 = arith.constant 0 : index
    %231 = vector.load %arg15[%c4_67, %c0_68] : memref<8x32xf32, #tpu.memory_space<vmem>>, vector<1x32xf32>
    tpu.vector_store %arg15[%c4_67, %c0_68], %230 {strides = array<i32>} : memref<8x32xf32, #tpu.memory_space<vmem>>, vector<1x32xf32>,
    %c5 = arith.constant 5 : index
    %232 = memref.load %arg0[%c5] : memref<8xi32, #tpu.memory_space<smem>>
    %233 = arith.index_cast %232 : i32 to index
    %c0_69 = arith.constant 0 : index
    %234 = vector.load %arg3[%233, %c0_69] : memref<64x128xf32, #tpu.memory_space<vmem>>, vector<1x128xf32>
    %c5_70 = arith.constant 5 : index
    %235 = memref.load %arg1[%c5_70] : memref<8xi32, #tpu.memory_space<smem>>
    %236 = arith.index_cast %235 : i32 to index
    %c0_71 = arith.constant 0 : index
    %237 = vector.load %arg4[%236, %c0_71] : memref<64x128xf32, #tpu.memory_space<vmem>>, vector<1x128xf32>
    %238 = arith.addf %234, %237 : vector<1x128xf32>
    %cst_72 = arith.constant dense<0.000000e+00> : vector<1x128xf32>
    %239 = tpu.matmul %211, %0, %cst_72 {dimension_numbers = #tpu.dot_dimension_numbers<[1], [0], [0], [1], [0, 0, 1, 1], [], []>} : vector<1x32xf32>, vector<32x128xf32>, vector<1x128xf32> -> vector<1x128xf32>
    %240 = arith.addf %238, %239 : vector<1x128xf32>
    %241 = arith.negf %240 : vector<1x128xf32>
    %242 = math.exp %241 : vector<1x128xf32>
    %cst_73 = arith.constant 1.000000e+00 : f32
    %243 = vector.broadcast %cst_73 : f32 to vector<1x128xf32>
    %244 = arith.addf %243, %242 : vector<1x128xf32>
    %245 = arith.divf %243, %244 : vector<1x128xf32>
    %246 = vector.extract_strided_slice %240 {offsets = [0, 64], sizes = [1, 32], strides = [1, 1]} : vector<1x128xf32> to vector<1x32xf32>
    %247 = math.tanh %246 : vector<1x32xf32>
    %248 = vector.extract_strided_slice %245 {offsets = [0, 32], sizes = [1, 32], strides = [1, 1]} : vector<1x128xf32> to vector<1x32xf32>
    %249 = arith.mulf %248, %208 : vector<1x32xf32>
    %250 = vector.extract_strided_slice %245 {offsets = [0, 0], sizes = [1, 32], strides = [1, 1]} : vector<1x128xf32> to vector<1x32xf32>
    %251 = arith.mulf %250, %247 : vector<1x32xf32>
    %252 = arith.addf %249, %251 : vector<1x32xf32>
    %253 = vector.extract_strided_slice %245 {offsets = [0, 96], sizes = [1, 32], strides = [1, 1]} : vector<1x128xf32> to vector<1x32xf32>
    %254 = math.tanh %252 : vector<1x32xf32>
    %255 = arith.mulf %253, %254 : vector<1x32xf32>
    %cst_74 = arith.constant dense<0.000000e+00> : vector<1x128xf32>
    %256 = tpu.matmul %255, %2, %cst_74 {dimension_numbers = #tpu.dot_dimension_numbers<[1], [0], [0], [1], [0, 0, 1, 1], [], []>} : vector<1x32xf32>, vector<32x128xf32>, vector<1x128xf32> -> vector<1x128xf32>
    %257 = arith.addf %3, %256 : vector<1x128xf32>
    %cst_75 = arith.constant dense<0.000000e+00> : vector<1x128xf32>
    %258 = tpu.matmul %230, %1, %cst_75 {dimension_numbers = #tpu.dot_dimension_numbers<[1], [0], [0], [1], [0, 0, 1, 1], [], []>} : vector<1x32xf32>, vector<32x128xf32>, vector<1x128xf32> -> vector<1x128xf32>
    %259 = arith.addf %257, %258 : vector<1x128xf32>
    %260 = arith.negf %259 : vector<1x128xf32>
    %261 = math.exp %260 : vector<1x128xf32>
    %cst_76 = arith.constant 1.000000e+00 : f32
    %262 = vector.broadcast %cst_76 : f32 to vector<1x128xf32>
    %263 = arith.addf %262, %261 : vector<1x128xf32>
    %264 = arith.divf %262, %263 : vector<1x128xf32>
    %265 = vector.extract_strided_slice %259 {offsets = [0, 64], sizes = [1, 32], strides = [1, 1]} : vector<1x128xf32> to vector<1x32xf32>
    %266 = math.tanh %265 : vector<1x32xf32>
    %267 = vector.extract_strided_slice %264 {offsets = [0, 32], sizes = [1, 32], strides = [1, 1]} : vector<1x128xf32> to vector<1x32xf32>
    %268 = arith.mulf %267, %227 : vector<1x32xf32>
    %269 = vector.extract_strided_slice %264 {offsets = [0, 0], sizes = [1, 32], strides = [1, 1]} : vector<1x128xf32> to vector<1x32xf32>
    %270 = arith.mulf %269, %266 : vector<1x32xf32>
    %271 = arith.addf %268, %270 : vector<1x32xf32>
    %272 = vector.extract_strided_slice %264 {offsets = [0, 96], sizes = [1, 32], strides = [1, 1]} : vector<1x128xf32> to vector<1x32xf32>
    %273 = math.tanh %271 : vector<1x32xf32>
    %274 = arith.mulf %272, %273 : vector<1x32xf32>
    %c5_77 = arith.constant 5 : index
    %c0_78 = arith.constant 0 : index
    %275 = vector.load %arg15[%c5_77, %c0_78] : memref<8x32xf32, #tpu.memory_space<vmem>>, vector<1x32xf32>
    tpu.vector_store %arg15[%c5_77, %c0_78], %274 {strides = array<i32>} : memref<8x32xf32, #tpu.memory_space<vmem>>, vector<1x32xf32>,
    %c6 = arith.constant 6 : index
    %276 = memref.load %arg0[%c6] : memref<8xi32, #tpu.memory_space<smem>>
    %277 = arith.index_cast %276 : i32 to index
    %c0_79 = arith.constant 0 : index
    %278 = vector.load %arg3[%277, %c0_79] : memref<64x128xf32, #tpu.memory_space<vmem>>, vector<1x128xf32>
    %c6_80 = arith.constant 6 : index
    %279 = memref.load %arg1[%c6_80] : memref<8xi32, #tpu.memory_space<smem>>
    %280 = arith.index_cast %279 : i32 to index
    %c0_81 = arith.constant 0 : index
    %281 = vector.load %arg4[%280, %c0_81] : memref<64x128xf32, #tpu.memory_space<vmem>>, vector<1x128xf32>
    %282 = arith.addf %278, %281 : vector<1x128xf32>
    %cst_82 = arith.constant dense<0.000000e+00> : vector<1x128xf32>
    %283 = tpu.matmul %255, %0, %cst_82 {dimension_numbers = #tpu.dot_dimension_numbers<[1], [0], [0], [1], [0, 0, 1, 1], [], []>} : vector<1x32xf32>, vector<32x128xf32>, vector<1x128xf32> -> vector<1x128xf32>
    %284 = arith.addf %282, %283 : vector<1x128xf32>
    %285 = arith.negf %284 : vector<1x128xf32>
    %286 = math.exp %285 : vector<1x128xf32>
    %cst_83 = arith.constant 1.000000e+00 : f32
    %287 = vector.broadcast %cst_83 : f32 to vector<1x128xf32>
    %288 = arith.addf %287, %286 : vector<1x128xf32>
    %289 = arith.divf %287, %288 : vector<1x128xf32>
    %290 = vector.extract_strided_slice %284 {offsets = [0, 64], sizes = [1, 32], strides = [1, 1]} : vector<1x128xf32> to vector<1x32xf32>
    %291 = math.tanh %290 : vector<1x32xf32>
    %292 = vector.extract_strided_slice %289 {offsets = [0, 32], sizes = [1, 32], strides = [1, 1]} : vector<1x128xf32> to vector<1x32xf32>
    %293 = arith.mulf %292, %252 : vector<1x32xf32>
    %294 = vector.extract_strided_slice %289 {offsets = [0, 0], sizes = [1, 32], strides = [1, 1]} : vector<1x128xf32> to vector<1x32xf32>
    %295 = arith.mulf %294, %291 : vector<1x32xf32>
    %296 = arith.addf %293, %295 : vector<1x32xf32>
    %297 = vector.extract_strided_slice %289 {offsets = [0, 96], sizes = [1, 32], strides = [1, 1]} : vector<1x128xf32> to vector<1x32xf32>
    %298 = math.tanh %296 : vector<1x32xf32>
    %299 = arith.mulf %297, %298 : vector<1x32xf32>
    %cst_84 = arith.constant dense<0.000000e+00> : vector<1x128xf32>
    %300 = tpu.matmul %299, %2, %cst_84 {dimension_numbers = #tpu.dot_dimension_numbers<[1], [0], [0], [1], [0, 0, 1, 1], [], []>} : vector<1x32xf32>, vector<32x128xf32>, vector<1x128xf32> -> vector<1x128xf32>
    %301 = arith.addf %3, %300 : vector<1x128xf32>
    %cst_85 = arith.constant dense<0.000000e+00> : vector<1x128xf32>
    %302 = tpu.matmul %274, %1, %cst_85 {dimension_numbers = #tpu.dot_dimension_numbers<[1], [0], [0], [1], [0, 0, 1, 1], [], []>} : vector<1x32xf32>, vector<32x128xf32>, vector<1x128xf32> -> vector<1x128xf32>
    %303 = arith.addf %301, %302 : vector<1x128xf32>
    %304 = arith.negf %303 : vector<1x128xf32>
    %305 = math.exp %304 : vector<1x128xf32>
    %cst_86 = arith.constant 1.000000e+00 : f32
    %306 = vector.broadcast %cst_86 : f32 to vector<1x128xf32>
    %307 = arith.addf %306, %305 : vector<1x128xf32>
    %308 = arith.divf %306, %307 : vector<1x128xf32>
    %309 = vector.extract_strided_slice %303 {offsets = [0, 64], sizes = [1, 32], strides = [1, 1]} : vector<1x128xf32> to vector<1x32xf32>
    %310 = math.tanh %309 : vector<1x32xf32>
    %311 = vector.extract_strided_slice %308 {offsets = [0, 32], sizes = [1, 32], strides = [1, 1]} : vector<1x128xf32> to vector<1x32xf32>
    %312 = arith.mulf %311, %271 : vector<1x32xf32>
    %313 = vector.extract_strided_slice %308 {offsets = [0, 0], sizes = [1, 32], strides = [1, 1]} : vector<1x128xf32> to vector<1x32xf32>
    %314 = arith.mulf %313, %310 : vector<1x32xf32>
    %315 = arith.addf %312, %314 : vector<1x32xf32>
    %316 = vector.extract_strided_slice %308 {offsets = [0, 96], sizes = [1, 32], strides = [1, 1]} : vector<1x128xf32> to vector<1x32xf32>
    %317 = math.tanh %315 : vector<1x32xf32>
    %318 = arith.mulf %316, %317 : vector<1x32xf32>
    %c6_87 = arith.constant 6 : index
    %c0_88 = arith.constant 0 : index
    %319 = vector.load %arg15[%c6_87, %c0_88] : memref<8x32xf32, #tpu.memory_space<vmem>>, vector<1x32xf32>
    tpu.vector_store %arg15[%c6_87, %c0_88], %318 {strides = array<i32>} : memref<8x32xf32, #tpu.memory_space<vmem>>, vector<1x32xf32>,
    %c7 = arith.constant 7 : index
    %320 = memref.load %arg0[%c7] : memref<8xi32, #tpu.memory_space<smem>>
    %321 = arith.index_cast %320 : i32 to index
    %c0_89 = arith.constant 0 : index
    %322 = vector.load %arg3[%321, %c0_89] : memref<64x128xf32, #tpu.memory_space<vmem>>, vector<1x128xf32>
    %c7_90 = arith.constant 7 : index
    %323 = memref.load %arg1[%c7_90] : memref<8xi32, #tpu.memory_space<smem>>
    %324 = arith.index_cast %323 : i32 to index
    %c0_91 = arith.constant 0 : index
    %325 = vector.load %arg4[%324, %c0_91] : memref<64x128xf32, #tpu.memory_space<vmem>>, vector<1x128xf32>
    %326 = arith.addf %322, %325 : vector<1x128xf32>
    %cst_92 = arith.constant dense<0.000000e+00> : vector<1x128xf32>
    %327 = tpu.matmul %299, %0, %cst_92 {dimension_numbers = #tpu.dot_dimension_numbers<[1], [0], [0], [1], [0, 0, 1, 1], [], []>} : vector<1x32xf32>, vector<32x128xf32>, vector<1x128xf32> -> vector<1x128xf32>
    %328 = arith.addf %326, %327 : vector<1x128xf32>
    %329 = arith.negf %328 : vector<1x128xf32>
    %330 = math.exp %329 : vector<1x128xf32>
    %cst_93 = arith.constant 1.000000e+00 : f32
    %331 = vector.broadcast %cst_93 : f32 to vector<1x128xf32>
    %332 = arith.addf %331, %330 : vector<1x128xf32>
    %333 = arith.divf %331, %332 : vector<1x128xf32>
    %334 = vector.extract_strided_slice %328 {offsets = [0, 64], sizes = [1, 32], strides = [1, 1]} : vector<1x128xf32> to vector<1x32xf32>
    %335 = math.tanh %334 : vector<1x32xf32>
    %336 = vector.extract_strided_slice %333 {offsets = [0, 32], sizes = [1, 32], strides = [1, 1]} : vector<1x128xf32> to vector<1x32xf32>
    %337 = arith.mulf %336, %296 : vector<1x32xf32>
    %338 = vector.extract_strided_slice %333 {offsets = [0, 0], sizes = [1, 32], strides = [1, 1]} : vector<1x128xf32> to vector<1x32xf32>
    %339 = arith.mulf %338, %335 : vector<1x32xf32>
    %340 = arith.addf %337, %339 : vector<1x32xf32>
    %341 = vector.extract_strided_slice %333 {offsets = [0, 96], sizes = [1, 32], strides = [1, 1]} : vector<1x128xf32> to vector<1x32xf32>
    %342 = math.tanh %340 : vector<1x32xf32>
    %343 = arith.mulf %341, %342 : vector<1x32xf32>
    %cst_94 = arith.constant dense<0.000000e+00> : vector<1x128xf32>
    %344 = tpu.matmul %343, %2, %cst_94 {dimension_numbers = #tpu.dot_dimension_numbers<[1], [0], [0], [1], [0, 0, 1, 1], [], []>} : vector<1x32xf32>, vector<32x128xf32>, vector<1x128xf32> -> vector<1x128xf32>
    %345 = arith.addf %3, %344 : vector<1x128xf32>
    %cst_95 = arith.constant dense<0.000000e+00> : vector<1x128xf32>
    %346 = tpu.matmul %318, %1, %cst_95 {dimension_numbers = #tpu.dot_dimension_numbers<[1], [0], [0], [1], [0, 0, 1, 1], [], []>} : vector<1x32xf32>, vector<32x128xf32>, vector<1x128xf32> -> vector<1x128xf32>
    %347 = arith.addf %345, %346 : vector<1x128xf32>
    %348 = arith.negf %347 : vector<1x128xf32>
    %349 = math.exp %348 : vector<1x128xf32>
    %cst_96 = arith.constant 1.000000e+00 : f32
    %350 = vector.broadcast %cst_96 : f32 to vector<1x128xf32>
    %351 = arith.addf %350, %349 : vector<1x128xf32>
    %352 = arith.divf %350, %351 : vector<1x128xf32>
    %353 = vector.extract_strided_slice %347 {offsets = [0, 64], sizes = [1, 32], strides = [1, 1]} : vector<1x128xf32> to vector<1x32xf32>
    %354 = math.tanh %353 : vector<1x32xf32>
    %355 = vector.extract_strided_slice %352 {offsets = [0, 32], sizes = [1, 32], strides = [1, 1]} : vector<1x128xf32> to vector<1x32xf32>
    %356 = arith.mulf %355, %315 : vector<1x32xf32>
    %357 = vector.extract_strided_slice %352 {offsets = [0, 0], sizes = [1, 32], strides = [1, 1]} : vector<1x128xf32> to vector<1x32xf32>
    %358 = arith.mulf %357, %354 : vector<1x32xf32>
    %359 = arith.addf %356, %358 : vector<1x32xf32>
    %360 = vector.extract_strided_slice %352 {offsets = [0, 96], sizes = [1, 32], strides = [1, 1]} : vector<1x128xf32> to vector<1x32xf32>
    %361 = math.tanh %359 : vector<1x32xf32>
    %362 = arith.mulf %360, %361 : vector<1x32xf32>
    %c7_97 = arith.constant 7 : index
    %c0_98 = arith.constant 0 : index
    %363 = vector.load %arg15[%c7_97, %c0_98] : memref<8x32xf32, #tpu.memory_space<vmem>>, vector<1x32xf32>
    tpu.vector_store %arg15[%c7_97, %c0_98], %362 {strides = array<i32>} : memref<8x32xf32, #tpu.memory_space<vmem>>, vector<1x32xf32>,
    %364 = tpu.concatenate %343, %362, %340, %359 in 1 : vector<1x32xf32>, vector<1x32xf32>, vector<1x32xf32>, vector<1x32xf32> -> vector<1x128xf32>
    %c0_99 = arith.constant 0 : index
    %c0_100 = arith.constant 0 : index
    %365 = vector.load %arg14[%c0_99, %c0_100] : memref<1x128xf32, #tpu.memory_space<vmem>>, vector<1x128xf32>
    tpu.vector_store %arg14[%c0_99, %c0_100], %364 {strides = array<i32>} : memref<1x128xf32, #tpu.memory_space<vmem>>, vector<1x128xf32>,
    %c0_101 = arith.constant 0 : index
    %c0_102 = arith.constant 0 : index
    %366 = vector.load %arg15[%c0_101, %c0_102] : memref<8x32xf32, #tpu.memory_space<vmem>>, vector<8x32xf32>
    %c0_103 = arith.constant 0 : index
    %c0_104 = arith.constant 0 : index
    %367 = vector.load %arg11[%c0_103, %c0_104] : memref<32x384xf32, #tpu.memory_space<vmem>>, vector<32x384xf32>
    %cst_105 = arith.constant dense<0.000000e+00> : vector<8x384xf32>
    %368 = tpu.matmul %366, %367, %cst_105 {dimension_numbers = #tpu.dot_dimension_numbers<[1], [0], [0], [1], [0, 0, 1, 1], [], []>} : vector<8x32xf32>, vector<32x384xf32>, vector<8x384xf32> -> vector<8x384xf32>
    %c0_106 = arith.constant 0 : index
    %c0_107 = arith.constant 0 : index
    %369 = vector.load %arg12[%c0_106, %c0_107] : memref<1x384xf32, #tpu.memory_space<vmem>>, vector<1x384xf32>
    %370 = vector.broadcast %369 : vector<1x384xf32> to vector<8x384xf32>
    %371 = arith.addf %368, %370 : vector<8x384xf32>
    %c0_108 = arith.constant 0 : index
    %c0_109 = arith.constant 0 : index
    %372 = vector.load %arg2[%c0_108, %c0_109] : memref<8x1xi32, #tpu.memory_space<vmem>>, vector<8x1xi32>
    %cst_110 = arith.constant 0.000000e+00 : f32
    %373 = vector.broadcast %cst_110 : f32 to vector<8x128xf32>
    %374 = vector.extract_strided_slice %371 {offsets = [0, 0], sizes = [8, 128], strides = [1, 1]} : vector<8x384xf32> to vector<8x128xf32>
    %c0_i32 = arith.constant 0 : i32
    %375 = vector.broadcast %c0_i32 : i32 to vector<8x1xi32>
    %376 = arith.cmpi eq, %372, %375 : vector<8x1xi32>
    %cst_111 = arith.constant 0.000000e+00 : f32
    %377 = vector.shape_cast %376 : vector<8x1xi1> to vector<8x1xi1>
    %378 = vector.broadcast %377 : vector<8x1xi1> to vector<8x128xi1>
    %379 = vector.broadcast %cst_111 : f32 to vector<8x128xf32>
    %380 = arith.select %378, %374, %379 : vector<8x128xi1>, vector<8x128xf32>
    %381 = arith.addf %373, %380 : vector<8x128xf32>
    %382 = vector.extract_strided_slice %371 {offsets = [0, 128], sizes = [8, 128], strides = [1, 1]} : vector<8x384xf32> to vector<8x128xf32>
    %c1_i32 = arith.constant 1 : i32
    %383 = vector.broadcast %c1_i32 : i32 to vector<8x1xi32>
    %384 = arith.cmpi eq, %372, %383 : vector<8x1xi32>
    %cst_112 = arith.constant 0.000000e+00 : f32
    %385 = vector.shape_cast %384 : vector<8x1xi1> to vector<8x1xi1>
    %386 = vector.broadcast %385 : vector<8x1xi1> to vector<8x128xi1>
    %387 = vector.broadcast %cst_112 : f32 to vector<8x128xf32>
    %388 = arith.select %386, %382, %387 : vector<8x128xi1>, vector<8x128xf32>
    %389 = arith.addf %381, %388 : vector<8x128xf32>
    %390 = vector.extract_strided_slice %371 {offsets = [0, 256], sizes = [8, 128], strides = [1, 1]} : vector<8x384xf32> to vector<8x128xf32>
    %c2_i32 = arith.constant 2 : i32
    %391 = vector.broadcast %c2_i32 : i32 to vector<8x1xi32>
    %392 = arith.cmpi eq, %372, %391 : vector<8x1xi32>
    %cst_113 = arith.constant 0.000000e+00 : f32
    %393 = vector.shape_cast %392 : vector<8x1xi1> to vector<8x1xi1>
    %394 = vector.broadcast %393 : vector<8x1xi1> to vector<8x128xi1>
    %395 = vector.broadcast %cst_113 : f32 to vector<8x128xf32>
    %396 = arith.select %394, %390, %395 : vector<8x128xi1>, vector<8x128xf32>
    %397 = arith.addf %389, %396 : vector<8x128xf32>
    %cst_114 = arith.constant dense<0xFF800000> : vector<8xf32>
    %398 = vector.multi_reduction <maximumf>, %397, %cst_114 [1] : vector<8x128xf32> to vector<8xf32>
    %399 = vector.shape_cast %398 : vector<8xf32> to vector<8x1xf32>
    %400 = vector.broadcast %399 : vector<8x1xf32> to vector<8x128xf32>
    %401 = arith.subf %397, %400 : vector<8x128xf32>
    %402 = math.exp %401 : vector<8x128xf32>
    %cst_115 = arith.constant dense<0.000000e+00> : vector<8xf32>
    %403 = vector.multi_reduction <add>, %402, %cst_115 [1] : vector<8x128xf32> to vector<8xf32>
    %404 = vector.shape_cast %403 : vector<8xf32> to vector<8x1xf32>
    %405 = math.log %404 : vector<8x1xf32>
    %406 = arith.addf %405, %399 : vector<8x1xf32>
    %407 = vector.broadcast %406 : vector<8x1xf32> to vector<8x128xf32>
    %408 = arith.subf %397, %407 : vector<8x128xf32>
    %c0_116 = arith.constant 0 : index
    %c0_117 = arith.constant 0 : index
    %409 = vector.load %arg13[%c0_116, %c0_117] : memref<8x128xf32, #tpu.memory_space<vmem>>, vector<8x128xf32>
    tpu.vector_store %arg13[%c0_116, %c0_117], %408 {strides = array<i32>} : memref<8x128xf32, #tpu.memory_space<vmem>>, vector<8x128xf32>,
    return
  }
}

</mosaic_0001>

<bundles_post_ra>
// kernel: tpu_custom_call.1
= control target key start
LH: loop header
LB: loop body
LE: loop exit
PB: predicated region body
PF: predicated region fallthrough
CT: control target
= control target key end

     0   :  { %20 = vsyncpa [#allocation6], 0  ;;  %s4212_s0 = inlined_call_operand.vmem [shape: s32[8], index: 0, kind: input, shape index: {}]   ;;  %s4213_s1 = inlined_call_operand.vmem [shape: s32[8], index: 1, kind: input, shape index: {}]   ;;  %s4214_s2 = inlined_call_operand.vmem [shape: s32[8,1], index: 2, kind: input, shape index: {}]   ;;  %s4215_s3 = inlined_call_operand.hbm [shape: f32[64,128], index: 3, kind: input, shape index: {}]   ;;  %s4216_s4 = inlined_call_operand.hbm [shape: f32[64,128], index: 4, kind: input, shape index: {}]   ;;  %s4217_s5 = inlined_call_operand.hbm [shape: f32[32,128], index: 5, kind: input, shape index: {}]   ;;  %s4218_s6 = inlined_call_operand.hbm [shape: f32[32,128], index: 6, kind: input, shape index: {}]   ;;  %s4219_s7 = inlined_call_operand.hbm [shape: f32[32,128], index: 7, kind: input, shape index: {}]   ;;  %s4220_s8 = inlined_call_operand.vmem [shape: f32[1,128], index: 8, kind: input, shape index: {}]   ;;  %s4221_s9 = inlined_call_operand.vmem [shape: f32[2,1,32], index: 9, kind: input, shape index: {}]   ;;  %s4222_s10 = inlined_call_operand.vmem [shape: f32[2,1,32], index: 10, kind: input, shape index: {}]   ;;  %s4223_s11 = inlined_call_operand.hbm [shape: f32[32,384], index: 11, kind: input, shape index: {}]   ;;  %s4224_s12 = inlined_call_operand.vmem [shape: f32[1,384], index: 12, kind: input, shape index: {}]   ;;  %s4225_s13 = inlined_call_operand.hbm [shape: f32[8,128], index: 13, kind: output, shape index: {0}]   ;;  %s4226_s14 = inlined_call_operand.hbm [shape: f32[1,128], index: 14, kind: output, shape index: {1}]  }
   0x1   :  { %21 = vsyncpa [#allocation8], 0 }
   0x2   :  { %22 = vsyncpa [#allocation4], 0 }
   0x3   :  { %23 = vsyncpa [#allocation11], 0 }
   0x4   :  { %24 = vsyncpa [#allocation14], 0 }
   0x5   :  { %25 = vsyncpa [#allocation17], 0 }
   0x6   :  { %26 = vsyncpa [#allocation5], 0 }
   0x7   :  { %27 = vsyncpa [#allocation20], 0  ;;  %s3572_s29 = smov [#allocation10]   ;;  %s3573_s15 = smov [#allocation13]  }
   0x8   :  { %s67_s30 = sshll.u32 %s3572_s29, 4  ;;  %s91_s16 = sshll.u32 %s3573_s15, 4  ;;  %s68_s30 = int_to_ptr.vmem [resolvable:$true] %s67_s30  ;;  %s92_s16 = int_to_ptr.vmem [resolvable:$true] %s91_s16 }
   0x9   :  { %s3380_s17 = scalar_lea.vmem %s68_s30, 1024  ;;  %p3385_p1 = scmp.lt.s32.totalorder %s68_s30, %s68_s30 }
   0xa   :  { %p3381_p0 = scmp.ne.s32.totalorder %s68_s30, %s3380_s17  ;;  %p3386_p2 = scmp.lt.s32.totalorder %s3380_s17, %s3380_s17 }
   0xc   :  { %p3387_p3 = por %p3386_p2, %p3385_p1 }
   0xe   :  { %p3388_p4 = pnand %p3387_p3, %p3381_p0 }
  0x10   :  { %3391 = shalt.err (!%p3388_p4)
}
  0x11   :  { %s3574_s18 = smov 128   ;;  %s3575_s19 = smov 8  }
  0x12   :  { %73 = dma.hbm_to_vmem [thread:$0]  %s4216_s4, 1024, %s68_s30, [#allocation11], %s3574_s18, %s3574_s18, %s3575_s19  }
  0x13   :  { %s3400_s22 = scalar_lea.vmem %s92_s16, 512  ;;  %p3405_p6 = scmp.lt.s32.totalorder %s92_s16, %s92_s16 }
  0x14   :  { %p3401_p5 = scmp.ne.s32.totalorder %s92_s16, %s3400_s22  ;;  %p3406_p7 = scmp.lt.s32.totalorder %s3400_s22, %s3400_s22 }
  0x16   :  { %p3407_p8 = por %p3406_p7, %p3405_p6 }
  0x18   :  { %p3408_p9 = pnand %p3407_p8, %p3401_p5 }
  0x1a   :  { %3411 = shalt.err (!%p3408_p9)
}
  0x1b   :  { %97 = dma.hbm_to_vmem [thread:$0]  %s4218_s6, 512, %s92_s16, [#allocation14], %s3574_s18, %s3574_s18, %s3575_s19  }
  0x1c   :  { %s34_s27 = sshll.u32 %s4212_s0, 4  ;;  %s44_s29 = sshll.u32 %s4213_s1, 4  ;;  %s35_s27 = int_to_ptr.vmem [resolvable:$true] %s34_s27  ;;  %s45_s29 = int_to_ptr.vmem [resolvable:$true] %s44_s29 }
  0x1d   :  { %s3412_s30 = scalar_lea.vmem %s35_s27, 16  ;;  %p3417_p11 = scmp.lt.s32.totalorder %s35_s27, %s35_s27 }
  0x1e   :  { %p3413_p10 = scmp.ne.s32.totalorder %s35_s27, %s3412_s30  ;;  %p3418_p12 = scmp.lt.s32.totalorder %s3412_s30, %s3412_s30 }
  0x20   :  { %p3419_p13 = por %p3418_p12, %p3417_p11 }
  0x22   :  { %p3420_p0 = pnand %p3419_p13, %p3413_p10 }
  0x24   :  { %3423 = shalt.err (!%p3420_p0)
}
  0x25   :  { %s3576_s15 = smov [#allocation3]   ;;  %s3424_s6 = scalar_lea.vmem %s45_s29, 16 }
  0x26   :  { %37 = dma.vmem_to_smem %s35_s27, 16, %s3576_s15, [#allocation6]  }
  0x27   :  { %p3425_p1 = scmp.ne.s32.totalorder %s45_s29, %s3424_s6  ;;  %p3429_p2 = scmp.lt.s32.totalorder %s45_s29, %s45_s29 }
  0x28   :  { %p3430_p3 = scmp.lt.s32.totalorder %s3424_s6, %s3424_s6 }
  0x2a   :  { %p3431_p4 = por %p3430_p3, %p3429_p2 }
  0x2c   :  { %p3432_p5 = pnand %p3431_p4, %p3425_p1 }
  0x2e   :  { %3435 = shalt.err (!%p3432_p5)
}
  0x2f   :  { %s3577_s0 = smov [#allocation7]   ;;  %s3578_s1 = smov [#allocation9]  }
  0x30   :  { %47 = dma.vmem_to_smem %s45_s29, 16, %s3577_s0, [#allocation8]  }
  0x31   :  { %s55_s16 = sshll.u32 %s3578_s1, 4  ;;  %s3579_s17 = smov [#allocation12]   ;;  %s56_s16 = int_to_ptr.vmem [resolvable:$true] %s55_s16 }
  0x32   :  { %s79_s20 = sshll.u32 %s3579_s17, 4  ;;  %s3444_s21 = scalar_lea.vmem %s56_s16, 1024  ;;  %s80_s20 = int_to_ptr.vmem [resolvable:$true] %s79_s20 }
  0x33   :  { %p3445_p6 = scmp.ne.s32.totalorder %s56_s16, %s3444_s21  ;;  %p3449_p7 = scmp.lt.s32.totalorder %s56_s16, %s56_s16 }
  0x34   :  { %p3450_p8 = scmp.lt.s32.totalorder %s3444_s21, %s3444_s21 }
  0x36   :  { %p3451_p9 = por %p3450_p8, %p3449_p7 }
  0x38   :  { %p3452_p10 = pnand %p3451_p9, %p3445_p6 }
  0x3a   :  { %3455 = shalt.err (!%p3452_p10)
}
  0x3b   :  { %61 = dma.hbm_to_vmem [thread:$0]  %s4215_s3, 1024, %s56_s16, [#allocation4], %s3574_s18, %s3574_s18, %s3575_s19  }
  0x3c   :  { %s3464_s24 = scalar_lea.vmem %s80_s20, 512  ;;  %p3469_p12 = scmp.lt.s32.totalorder %s80_s20, %s80_s20 }
  0x3d   :  { %p3465_p11 = scmp.ne.s32.totalorder %s80_s20, %s3464_s24  ;;  %p3470_p13 = scmp.lt.s32.totalorder %s3464_s24, %s3464_s24 }
  0x3f   :  { %p3471_p0 = por %p3470_p13, %p3469_p12 }
  0x41   :  { %p3472_p1 = pnand %p3471_p0, %p3465_p11 }
  0x43   :  { %3475 = shalt.err (!%p3472_p1)
}
  0x44   :  { %85 = dma.hbm_to_vmem [thread:$0]  %s4217_s5, 512, %s80_s20, [#allocation11], %s3574_s18, %s3574_s18, %s3575_s19  }
  0x45   :  { %s3580_s27 = smov [#allocation15]   ;;  %s3581_s28 = smov [#allocation16]  }
  0x46   :  { %s103_s4 = sshll.u32 %s3580_s27, 4  ;;  %s121_s29 = sshll.u32 %s3581_s28, 4  ;;  %s104_s4 = int_to_ptr.vmem [resolvable:$true] %s103_s4  ;;  %s122_s29 = int_to_ptr.vmem [resolvable:$true] %s121_s29 }
  0x47   :  { %s3484_s3 = scalar_lea.vmem %s104_s4, 512  ;;  %p3489_p3 = scmp.lt.s32.totalorder %s104_s4, %s104_s4 }
  0x48   :  { %p3485_p2 = scmp.ne.s32.totalorder %s104_s4, %s3484_s3  ;;  %p3490_p4 = scmp.lt.s32.totalorder %s3484_s3, %s3484_s3 }
  0x4a   :  { %p3491_p5 = por %p3490_p4, %p3489_p3 }
  0x4c   :  { %p3492_p6 = pnand %p3491_p5, %p3485_p2 }
  0x4e   :  { %3495 = shalt.err (!%p3492_p6)
}
  0x4f   :  { %109 = dma.hbm_to_vmem [thread:$0]  %s4219_s7, 512, %s104_s4, [#allocation14], %s3574_s18, %s3574_s18, %s3575_s19  }
  0x50   :  { %s3504_s5 = scalar_lea.vmem %s122_s29, 1536  ;;  %p3509_p8 = scmp.lt.s32.totalorder %s122_s29, %s122_s29 }
  0x51   :  { %p3505_p7 = scmp.ne.s32.totalorder %s122_s29, %s3504_s5  ;;  %p3510_p9 = scmp.lt.s32.totalorder %s3504_s5, %s3504_s5 }
  0x53   :  { %p3511_p10 = por %p3510_p9, %p3509_p8 }
  0x55   :  { %p3512_p11 = pnand %p3511_p10, %p3505_p7 }
  0x57   :  { %3515 = shalt.err (!%p3512_p11)
}
  0x58   :  { %s3582_s6 = smov 384   ;;  %s3583_s0 = smov 24  }
  0x59   :  { %127 = dma.hbm_to_vmem [thread:$0]  %s4223_s11, 1536, %s122_s29, [#allocation17], %s3582_s6, %s3582_s6, %s3583_s0  }
  0x5a   :  { %3556 = dma.done.wait [#allocation6], 16  }
  0x5b   :  { %3557 = vsyncadd [#allocation6], 4294967280 }
  0x5c   :  { %3558 = dma.done.wait [#allocation8], 16  }
  0x5d   :  { %3559 = vsyncadd [#allocation8], 4294967280 }
  0x5e   :  { %3560 = dma.done.wait [#allocation4], 1024  }
  0x5f   :  { %3561 = vsyncadd [#allocation4], 4294966272 }
  0x60   :  { %3562 = dma.done.wait [#allocation11], 1536  }
  0x61   :  { %3563 = vsyncadd [#allocation11], 4294965760 }
  0x62   :  { %3564 = dma.done.wait [#allocation14], 1024  }
  0x63   :  { %3565 = vsyncadd [#allocation14], 4294966272 }
  0x64   :  { %3566 = dma.done.wait [#allocation17], 1536  }
  0x65   :  { %3567 = vsyncadd [#allocation17], 4294965760 }
  0x66   :  { %154 = sfence }
  0x67   :  { %v3705_v0 = vld [vmem:[#allocation12 + $0x18] sm:$0xff]  ;;  %v3584_v1 = vmov 0.0   ;;  %v3708_v2 = vld [vmem:[#allocation12 + $0x10] sm:$0xff]  ;;  %vm3585_vm0 = vmmov 0   ;;  %v3715_v3 = vld [vmem:[#allocation12 + $0x8] sm:$0xff]  ;;  %vm181_vm1 = vcmask 261120  }
  0x68   :  { %2931 = vmatprep.subr.mxu0 %v3584_v1  ;;  %2939 = vmatprep.mubr.msk.f32.mxu0 %vm3585_vm0, %v3584_v1  ;;  %v3721_v4 = vld [vmem:[#allocation12] sm:$0xff]  ;;  %v168_v5 = vld [vmem:[%s4221_s9] sm:$0x1]  ;;  %s174_s18 = sld [smem:[#allocation3]]  ;;  %s3586_s21 = smov 64   ;;  %v3744_v25 = vld [vmem:[#allocation13 + $0x10] sm:$0xff] }
  0x69   :  { %2932 = vmatpush3.msra.mxu0 %v3705_v0  ;;  %2942 = vmatprep.subr.mxu1 %v3584_v1  ;;  %s177_s19 = sld [smem:[#allocation7]]  ;;  %v2751_v13 = vld [vmem:[%s4222_s10] ss:$0 sm:$0xff]  ;;  %s3587_s24 = smov 32   ;;  %v3750_v27 = vld [vmem:[#allocation15 + $0x10] sm:$0xff]  ;;  %v3753_v28 = vld [vmem:[#allocation13 + $0x8] sm:$0xff] }
  0x6a   :  { %2933 = vmatprep.subr.mxu0 %v3584_v1  ;;  %2950 = vmatprep.mubr.msk.f32.mxu1 %vm3585_vm0, %v3584_v1  ;;  %v3742_v24 = vld [vmem:[#allocation13 + $0x18] sm:$0xff]  ;;  %v3756_v29 = vld [vmem:[#allocation15 + $0x8] sm:$0xff]  ;;  %v3761_v30 = vld [vmem:[#allocation13] sm:$0xff]  ;;  %s2756_s27 = sld [smem:[#allocation7 + $0x1]]  ;;  %vm474_vm2 = vcmask 253952   ;;  %vm2481_vm9 = vcmask 523264  }
  0x6b   :  { %2934 = vmatpush3.msra.mxu0 %v3708_v2  ;;  %v3746_v26 = vld [vmem:[#allocation15 + $0x18] sm:$0xff]  ;;  %2943 = vmatpush3.msra.mxu1 %v3742_v24  ;;  %v3771_v32 = vld [vmem:[#allocation15] sm:$0xff]  ;;  %s2763_s5 = sld [smem:[#allocation7 + $0x2]]  ;;  %vm2483_vm10 = vcmask 785408  }
  0x6c   :  { %2935 = vmatprep.subr.mxu0 %v3584_v1  ;;  %2944 = vmatprep.subr.mxu1 %v3584_v1  ;;  %v2747_v33 = vld [vmem:[%s4221_s9 + $0x1] sm:$0x1]  ;;  %s2755_s9 = sld [smem:[#allocation3 + $0x1]]  ;;  %v3815_v39 = vld [vmem:[%s4220_s8] sm:$0x1] }
  0x6d   :  { %2936 = vmatpush3.msra.mxu0 %v3715_v3  ;;  %2945 = vmatpush3.msra.mxu1 %v3744_v25  ;;  %v2748_v51 = vld [vmem:[%s4222_s10 + $0x1] sm:$0x1]  ;;  %s2762_s10 = sld [smem:[#allocation3 + $0x2]] }
  0x6e   :  { %2937 = vmatprep.subr.mxu0 %v3584_v1  ;;  %s175_s17 = scalar_lea.vmem [#allocation9], %s174_s18  ;;  %2946 = vmatprep.subr.mxu1 %v3584_v1  ;;  %s2769_s1 = sld [smem:[#allocation3 + $0x3]] }
  0x6f   :  { %2938 = vmatpush3.msra.mxu0 %v3721_v4  ;;  %v176_v6 = vld [vmem:[%s175_s17] sm:$0x1]  ;;  %s178_s20 = scalar_lea.vmem [#allocation10], %s177_s19  ;;  %2947 = vmatpush3.msra.mxu1 %v3753_v28  ;;  %s2770_s16 = sld [smem:[#allocation7 + $0x3]] }
  0x70   :  { %2940 = vmatmul.mubr.msk.f32.vlgmr.msra.gmra.mxu0 %vm181_vm1, %v168_v5  ;;  %2953 = vmatprep.subr.mxu0 %v3584_v1  ;;  %v179_v7 = vld [vmem:[%s178_s20] sm:$0x1]  ;;  %s480_s3 = scalar_lea.vmem [#allocation10], %s2756_s27  ;;  %s2776_s18 = sld [smem:[#allocation3 + $0x4]] }
  0x71   :  { %2961 = vmatprep.mubr.msk.f32.mxu0 %vm3585_vm0, %v3584_v1  ;;  %v180_v8 = vadd.f32 %v179_v7, %v176_v6  ;;  %2954 = vmatpush3.msra.mxu0 %v3746_v26  ;;  %v481_v44 = vld [vmem:[%s480_s3] sm:$0x1]  ;;  %s764_s0 = scalar_lea.vmem [#allocation10], %s2763_s5  ;;  %s2777_s19 = sld [smem:[#allocation7 + $0x4]] }
  0x72   :  { %2955 = vmatprep.subr.mxu0 %v3584_v1  ;;  %2948 = vmatprep.subr.mxu1 %v3584_v1  ;;  %s477_s29 = scalar_lea.vmem [#allocation9], %s2755_s9  ;;  %s2783_s22 = sld [smem:[#allocation3 + $0x5]] }
  0x73   :  { %2956 = vmatpush3.msra.mxu0 %v3750_v27  ;;  %2949 = vmatpush3.msra.mxu1 %v3761_v30  ;;  %v478_v43 = vld [vmem:[%s477_s29] sm:$0x1]  ;;  %s761_s6 = scalar_lea.vmem [#allocation9], %s2762_s10  ;;  %s2784_s23 = sld [smem:[#allocation7 + $0x5]] }
  0x74   :  { %2957 = vmatprep.subr.mxu0 %v3584_v1  ;;  %2964 = vmatprep.subr.mxu1 %v3584_v1  ;;  %v482_v46 = vadd.f32 %v481_v44, %v478_v43  ;;  %s1045_s7 = scalar_lea.vmem [#allocation9], %s2769_s1  ;;  %s2790_s9 = sld [smem:[#allocation3 + $0x6]] }
  0x75   :  { %2958 = vmatpush3.msra.mxu0 %v3756_v29  ;;  %s1048_s11 = scalar_lea.vmem [#allocation10], %s2770_s16  ;;  %s2791_s27 = sld [smem:[#allocation7 + $0x6]] }
  0x76   :  { %2959 = vmatprep.subr.mxu0 %v3584_v1  ;;  %s1329_s17 = scalar_lea.vmem [#allocation9], %s2776_s18  ;;  %s2797_s29 = sld [smem:[#allocation3 + $0x7]] }
  0x77   :  { %2960 = vmatpush3.msra.mxu0 %v3771_v32  ;;  %s1332_s20 = scalar_lea.vmem [#allocation10], %s2777_s19  ;;  %s2798_s3 = sld [smem:[#allocation7 + $0x7]] }
  0x78   :  { %2962 = vmatmul.mubr.msk.f32.vlgmr.msra.gmra.mxu0 %vm181_vm1, %v2747_v33  ;;  %2975 = vmatprep.subr.mxu0 %v3584_v1  ;;  %s1613_s25 = scalar_lea.vmem [#allocation9], %s2783_s22 }
  0x79   :  { %2976 = vmatpush3.msra.mxu0 %v3742_v24  ;;  %2983 = vmatprep.mubr.msk.f32.mxu0 %vm3585_vm0, %v3584_v1  ;;  %s1616_s26 = scalar_lea.vmem [#allocation10], %s2784_s23 }
  0x7a   :  { %2977 = vmatprep.subr.mxu0 %v3584_v1  ;;  %s1897_s4 = scalar_lea.vmem [#allocation9], %s2790_s9 }
  0x7b   :  { %2978 = vmatpush3.msra.mxu0 %v3744_v25  ;;  %s1900_s28 = scalar_lea.vmem [#allocation10], %s2791_s27 }
  0x7c   :  { %2979 = vmatprep.subr.mxu0 %v3584_v1  ;;  %s2181_s10 = scalar_lea.vmem [#allocation9], %s2797_s29 }
  0x7d   :  { %2980 = vmatpush3.msra.mxu0 %v3753_v28  ;;  %s2184_s5 = scalar_lea.vmem [#allocation10], %s2798_s3 }
  0x7e   :  { %2981 = vmatprep.subr.mxu0 %v3584_v1 }
  0x7f   :  { %2982 = vmatpush3.msra.mxu0 %v3761_v30 }
  0x80   :  { %2997 = vmatprep.subr.mxu0 %v3584_v1 }
 0x130   :  { %v251_v9 = vpop.f32.mrf.mxu0 }
 0x131   :  { %v255_v10 = vadd.f32 %v251_v9, %v180_v8 }
 0x132   :  { %v2941_v11 = vpop.f32.mrf.mxu0 }
 0x133   :  { %3227 = vtanh.f32 %v255_v10  ;;  %v2750_v14 = vmul.f32 -1.442695, %v255_v10 }
 0x135   :  { %3229 = vpow2.f32 %v2750_v14 }
 0x138   :  { %v433_v37 = vpop.f32.mrf.mxu0 }
 0x13a   :  { %v2963_v38 = vpop.f32.mrf.mxu0 }
 0x140   :  { %v3228_v12 = vpop.eup %3227 }
 0x141   :  { %273 = vrot.lane.b32.xlu0 %v3228_v12, %s3586_s21 }
 0x142   :  { %v3230_v15 = vpop.eup %3229 }
 0x143   :  { %v259_v16 = vadd.f32 1.0, %v3230_v15  ;;  %v467_v15 = vlaneseq }
 0x145   :  { %268 = vrot.lane.b32.xlu0 %v2751_v13, %s3587_s24  ;;  %3231 = vrcp.f32 %v259_v16  ;;  %v3835_v16 = vshrl.u32 %v467_v15, 7 }
 0x152   :  { %v3232_v17 = vpop.eup %3231 }
 0x1b3   :  { %v274_v18 = vpop.permute.xlu0 %273 }
 0x1b4   :  { %v276_v19 = vmul.f32 %v3232_v17, %v274_v18 }
 0x1b6   :  { %278 = vrot.lane.b32.xlu1 %v276_v19, %s3587_s24  ;;  %v3839_v19 = vsub.s32 0, %v3835_v16 }
 0x1b7   :  { %v269_v20 = vpop.permute.xlu0 %268 }
 0x1b8   :  { %v271_v21 = vmul.f32 %v3232_v17, %v269_v20 }
 0x228   :  { %v279_v22 = vpop.permute.xlu1 %278 }
 0x229   :  { %v3739_v23 = vadd.f32 %v279_v22, %v271_v21 }
 0x22b   :  { %3233 = vtanh.f32 %v3739_v23 }
 0x238   :  { %v3234_v31 = vpop.eup %3233 }
 0x239   :  { %284 = vrot.lane.b32.xlu1 %v3234_v31, %s3586_s21 }
 0x2ab   :  { %v285_v34 = vpop.permute.xlu1 %284 }
 0x2ac   :  { %v287_v35 = vmul.f32 %v3232_v17, %v285_v34 }
 0x2ae   :  { %289 = vrot.lane.b32.xlu0 %v287_v35, %s3587_s24  ;;  %v762_v35 = vld [vmem:[%s761_s6] sm:$0x1] }
 0x320   :  { %v290_v36 = vpop.permute.xlu0 %289 }
 0x321   :  { %2951 = vmatmul.mubr.msk.f32.vlgmr.msra.gmra.mxu1 %vm181_vm1, %v290_v36 }
 0x322   :  { %2965 = vmatpush3.msra.mxu1 %v3705_v0  ;;  %2972 = vmatprep.mubr.msk.f32.mxu1 %vm3585_vm0, %v3584_v1 }
 0x323   :  { %2966 = vmatprep.subr.mxu1 %v3584_v1 }
 0x324   :  { %2967 = vmatpush3.msra.mxu1 %v3708_v2 }
 0x325   :  { %2968 = vmatprep.subr.mxu1 %v3584_v1 }
 0x326   :  { %2969 = vmatpush3.msra.mxu1 %v3715_v3 }
 0x327   :  { %2970 = vmatprep.subr.mxu1 %v3584_v1 }
 0x328   :  { %2971 = vmatpush3.msra.mxu1 %v3721_v4 }
 0x329   :  { %2973 = vmatmul.mubr.msk.f32.vlgmr.msra.gmra.mxu1 %vm181_vm1, %v290_v36  ;;  %2986 = vmatprep.subr.mxu1 %v3584_v1  ;;  %v765_v36 = vld [vmem:[%s764_s0] sm:$0x1] }
 0x32a   :  { %2987 = vmatpush3.msra.mxu1 %v3746_v26  ;;  %2994 = vmatprep.mubr.msk.f32.mxu1 %vm3585_vm0, %v3584_v1  ;;  %v766_v38 = vadd.f32 %v765_v36, %v762_v35 }
 0x32b   :  { %2988 = vmatprep.subr.mxu1 %v3584_v1 }
 0x32c   :  { %2989 = vmatpush3.msra.mxu1 %v3750_v27 }
 0x32d   :  { %2990 = vmatprep.subr.mxu1 %v3584_v1 }
 0x32e   :  { %2991 = vmatpush3.msra.mxu1 %v3756_v29 }
 0x32f   :  { %2992 = vmatprep.subr.mxu1 %v3584_v1 }
 0x330   :  { %2993 = vmatpush3.msra.mxu1 %v3771_v32 }
 0x331   :  { %3008 = vmatprep.subr.mxu1 %v3584_v1 }
 0x3e1   :  { %v359_v40 = vpop.f32.mrf.mxu1 }
 0x3e2   :  { %v363_v41 = vadd.f32 %v359_v40, %v3815_v39 }
 0x3e3   :  { %v2952_v42 = vpop.f32.mrf.mxu1 }
 0x3e4   :  { %v437_v45 = vadd.f32 %v433_v37, %v363_v41 }
 0x3e6   :  { %3235 = vtanh.f32 %v437_v45  ;;  %v2754_v54 = vmul.f32 -1.442695, %v437_v45 }
 0x3e9   :  { %v549_v47 = vpop.f32.mrf.mxu1 }
 0x3ea   :  { %v553_v48 = vadd.f32 %v549_v47, %v482_v46 }
 0x3eb   :  { %v2974_v49 = vpop.f32.mrf.mxu1 }
 0x3ec   :  { %3237 = vtanh.f32 %v553_v48  ;;  %v2758_v53 = vmul.f32 -1.442695, %v553_v48 }
 0x3ee   :  { %3239 = vpow2.f32 %v2758_v53 }
 0x3ef   :  { %3241 = vpow2.f32 %v2754_v54 }
 0x3f3   :  { %v3236_v50 = vpop.eup %3235 }
 0x3f4   :  { %451 = vrot.lane.b32.xlu0 %v3236_v50, %s3586_s21 }
 0x3f8   :  { %446 = vrot.lane.b32.xlu0 %v2748_v51, %s3587_s24 }
 0x3f9   :  { %v3238_v52 = vpop.eup %3237 }
 0x3fa   :  { %563 = vrot.lane.b32.xlu1 %v3238_v52, %s3586_s21 }
 0x3fb   :  { %v3240_v55 = vpop.eup %3239 }
 0x3fc   :  { %v557_v56 = vadd.f32 1.0, %v3240_v55  ;;  %v3242_v57 = vpop.eup %3241 }
 0x3fd   :  { %v441_v58 = vadd.f32 1.0, %v3242_v57 }
 0x3fe   :  { %3243 = vrcp.f32 %v557_v56 }
 0x3ff   :  { %3245 = vrcp.f32 %v441_v58 }
 0x40b   :  { %v3244_v59 = vpop.eup %3243 }
 0x40c   :  { %v3246_v63 = vpop.eup %3245  ;;  %v561_v6 = vmul.f32 %v3244_v59, %v3739_v23 }
 0x466   :  { %v452_v62 = vpop.permute.xlu0 %451 }
 0x467   :  { %v454_v5 = vmul.f32 %v3246_v63, %v452_v62 }
 0x46a   :  { %v447_v7 = vpop.permute.xlu0 %446 }
 0x46b   :  { %v449_v10 = vmul.f32 %v3246_v63, %v447_v7 }
 0x46c   :  { %v564_v60 = vpop.permute.xlu1 %563 }
 0x46d   :  { %v566_v61 = vmul.f32 %v3244_v59, %v564_v60 }
 0x46f   :  { %568 = vrot.lane.b32.xlu1 %v566_v61, %s3587_s24 }
 0x473   :  { %456 = vrot.lane.b32.xlu1 %v454_v5, %s3587_s24 }
 0x4e1   :  { %v569_v8 = vpop.permute.xlu1 %568 }
 0x4e2   :  { %v3827_v9 = vadd.f32 %v569_v8, %v561_v6 }
 0x4e4   :  { %3247 = vtanh.f32 %v3827_v9 }
 0x4e5   :  { %v457_v11 = vpop.permute.xlu1 %456 }
 0x4e6   :  { %v3830_v12 = vadd.f32 %v457_v11, %v449_v10 }
 0x4e8   :  { %3249 = vtanh.f32 %v3830_v12 }
 0x4f1   :  { %v3248_v13 = vpop.eup %3247 }
 0x4f2   :  { %574 = vrot.lane.b32.xlu0 %v3248_v13, %s3586_s21 }
 0x4f5   :  { %v3250_v14 = vpop.eup %3249 }
 0x4f6   :  { %462 = vrot.lane.b32.xlu1 %v3250_v14, %s3586_s21 }
 0x564   :  { %v575_v17 = vpop.permute.xlu0 %574 }
 0x565   :  { %v577_v18 = vmul.f32 %v3244_v59, %v575_v17 }
 0x567   :  { %579 = vrot.lane.b32.xlu0 %v577_v18, %s3587_s24 }
 0x568   :  { %v463_v20 = vpop.permute.xlu1 %462 }
 0x569   :  { %v465_v21 = vmul.f32 %v3246_v63, %v463_v20 }
 0x56b   :  { %v470_v22 = vrot.slane %v465_v21, %v3839_v19 }
 0x56d   :  { %471 = vrot.lane.b32.xlu1 %v470_v22, %s3587_s24 }
 0x5d9   :  { %v580_v23 = vpop.permute.xlu0 %579 }
 0x5da   :  { %2984 = vmatmul.mubr.msk.f32.vlgmr.msra.gmra.mxu0 %vm181_vm1, %v580_v23 }
 0x5db   :  { %2998 = vmatpush3.msra.mxu0 %v3705_v0  ;;  %3005 = vmatprep.mubr.msk.f32.mxu0 %vm3585_vm0, %v3584_v1 }
 0x5dc   :  { %2999 = vmatprep.subr.mxu0 %v3584_v1 }
 0x5dd   :  { %3000 = vmatpush3.msra.mxu0 %v3708_v2 }
 0x5de   :  { %3001 = vmatprep.subr.mxu0 %v3584_v1 }
 0x5df   :  { %3002 = vmatpush3.msra.mxu0 %v3715_v3  ;;  %v472_v31 = vpop.permute.xlu1 %471 }
 0x5e0   :  { %3003 = vmatprep.subr.mxu0 %v3584_v1  ;;  %475 = vst.msk [vmem:[#allocation2] sm:$0x1] %vm474_vm2, %v472_v31  ;;  %2995 = vmatmul.mubr.msk.f32.vlgmr.msra.gmra.mxu1 %vm181_vm1, %v472_v31  ;;  %v1049_v31 = vld [vmem:[%s1048_s11] sm:$0x1] }
 0x5e1   :  { %3004 = vmatpush3.msra.mxu0 %v3721_v4  ;;  %3009 = vmatpush3.msra.mxu1 %v3742_v24 }
 0x5e2   :  { %3006 = vmatmul.mubr.msk.f32.vlgmr.msra.gmra.mxu0 %vm181_vm1, %v580_v23  ;;  %3010 = vmatprep.subr.mxu1 %v3584_v1  ;;  %v1046_v23 = vld [vmem:[%s1045_s7] sm:$0x1] }
 0x5e3   :  { %3019 = vmatprep.subr.mxu0 %v3584_v1  ;;  %3011 = vmatpush3.msra.mxu1 %v3744_v25 }
 0x5e4   :  { %3020 = vmatpush3.msra.mxu0 %v3746_v26  ;;  %3012 = vmatprep.subr.mxu1 %v3584_v1 }
 0x5e5   :  { %3021 = vmatprep.subr.mxu0 %v3584_v1  ;;  %3013 = vmatpush3.msra.mxu1 %v3753_v28 }
 0x5e6   :  { %3022 = vmatpush3.msra.mxu0 %v3750_v27  ;;  %3014 = vmatprep.subr.mxu1 %v3584_v1 }
 0x5e7   :  { %3023 = vmatprep.subr.mxu0 %v3584_v1  ;;  %3015 = vmatpush3.msra.mxu1 %v3761_v30 }
 0x5e8   :  { %3024 = vmatpush3.msra.mxu0 %v3756_v29  ;;  %3016 = vmatprep.mubr.msk.f32.mxu1 %vm3585_vm0, %v3584_v1 }
 0x5e9   :  { %3025 = vmatprep.subr.mxu0 %v3584_v1  ;;  %3030 = vmatprep.subr.mxu1 %v3584_v1 }
 0x5ea   :  { %3026 = vmatpush3.msra.mxu0 %v3771_v32  ;;  %3027 = vmatprep.mubr.msk.f32.mxu0 %vm3585_vm0, %v3584_v1 }
 0x5eb   :  { %3041 = vmatprep.subr.mxu0 %v3584_v1 }
 0x69a   :  { %v649_v33 = vpop.f32.mrf.mxu0 }
 0x69b   :  { %v653_v37 = vadd.f32 %v649_v33, %v3815_v39 }
 0x69c   :  { %v2985_v34 = vpop.f32.mrf.mxu0 }
 0x69d   :  { %v1050_v34 = vadd.f32 %v1049_v31, %v1046_v23 }
 0x6a0   :  { %v722_v40 = vpop.f32.mrf.mxu1 }
 0x6a1   :  { %v726_v41 = vadd.f32 %v722_v40, %v653_v37 }
 0x6a2   :  { %v833_v42 = vpop.f32.mrf.mxu0  ;;  %v2996_v43 = vpop.f32.mrf.mxu1 }
 0x6a3   :  { %3251 = vtanh.f32 %v726_v41  ;;  %v837_v44 = vadd.f32 %v833_v42, %v766_v38  ;;  %v2761_v48 = vmul.f32 -1.442695, %v726_v41 }
 0x6a4   :  { %v3007_v45 = vpop.f32.mrf.mxu0 }
 0x6a5   :  { %3253 = vtanh.f32 %v837_v44  ;;  %v2765_v49 = vmul.f32 -1.442695, %v837_v44 }
 0x6a6   :  { %3255 = vpow2.f32 %v2761_v48 }
 0x6a7   :  { %3257 = vpow2.f32 %v2765_v49 }
 0x6b0   :  { %v3252_v46 = vpop.eup %3251 }
 0x6b1   :  { %736 = vrot.lane.b32.xlu1 %v3252_v46, %s3586_s21 }
 0x6b2   :  { %v3254_v47 = vpop.eup %3253 }
 0x6b3   :  { %847 = vrot.lane.b32.xlu0 %v3254_v47, %s3586_s21  ;;  %v3256_v50 = vpop.eup %3255 }
 0x6b4   :  { %v3258_v51 = vpop.eup %3257  ;;  %v730_v52 = vadd.f32 1.0, %v3256_v50 }
 0x6b5   :  { %v841_v53 = vadd.f32 1.0, %v3258_v51 }
 0x6b6   :  { %3259 = vrcp.f32 %v730_v52 }
 0x6b7   :  { %3261 = vrcp.f32 %v841_v53 }
 0x6c3   :  { %v3260_v54 = vpop.eup %3259 }
 0x6c4   :  { %v3262_v57 = vpop.eup %3261  ;;  %v734_v60 = vmul.f32 %v3260_v54, %v3830_v12 }
 0x6c5   :  { %v845_v63 = vmul.f32 %v3262_v57, %v3827_v9 }
 0x723   :  { %v737_v55 = vpop.permute.xlu1 %736 }
 0x724   :  { %v739_v56 = vmul.f32 %v3260_v54, %v737_v55 }
 0x725   :  { %v848_v58 = vpop.permute.xlu0 %847 }
 0x726   :  { %741 = vrot.lane.b32.xlu1 %v739_v56, %s3587_s24  ;;  %v850_v59 = vmul.f32 %v3262_v57, %v848_v58 }
 0x728   :  { %852 = vrot.lane.b32.xlu0 %v850_v59, %s3587_s24 }
 0x798   :  { %v742_v61 = vpop.permute.xlu1 %741 }
 0x799   :  { %v3883_v62 = vadd.f32 %v742_v61, %v734_v60 }
 0x79a   :  { %v853_v5 = vpop.permute.xlu0 %852 }
 0x79b   :  { %3263 = vtanh.f32 %v3883_v62  ;;  %v3887_v6 = vadd.f32 %v853_v5, %v845_v63 }
 0x79d   :  { %3265 = vtanh.f32 %v3887_v6 }
 0x7a8   :  { %v3264_v7 = vpop.eup %3263 }
 0x7a9   :  { %747 = vrot.lane.b32.xlu1 %v3264_v7, %s3586_s21 }
 0x7aa   :  { %v3266_v8 = vpop.eup %3265 }
 0x7ab   :  { %858 = vrot.lane.b32.xlu0 %v3266_v8, %s3586_s21 }
 0x81b   :  { %v748_v10 = vpop.permute.xlu1 %747 }
 0x81c   :  { %v750_v11 = vmul.f32 %v3260_v54, %v748_v10 }
 0x81d   :  { %v859_v13 = vpop.permute.xlu0 %858 }
 0x81e   :  { %v755_v12 = vrot.slane %v750_v11, %v3839_v19  ;;  %v861_v14 = vmul.f32 %v3262_v57, %v859_v13 }
 0x820   :  { %756 = vrot.lane.b32.xlu1 %v755_v12, %s3587_s24  ;;  %863 = vrot.lane.b32.xlu0 %v861_v14, %s3587_s24 }
 0x892   :  { %v757_v9 = vpop.permute.xlu1 %756  ;;  %v864_v15 = vpop.permute.xlu0 %863 }
 0x893   :  { %759 = vst.msk [vmem:[#allocation2 + $0x1] sm:$0x1] %vm474_vm2, %v757_v9  ;;  %3028 = vmatmul.mubr.msk.f32.vlgmr.msra.gmra.mxu0 %vm181_vm1, %v757_v9  ;;  %3017 = vmatmul.mubr.msk.f32.vlgmr.msra.gmra.mxu1 %vm181_vm1, %v864_v15  ;;  %v1330_v9 = vld [vmem:[%s1329_s17] sm:$0x1] }
 0x894   :  { %3042 = vmatpush3.msra.mxu0 %v3742_v24  ;;  %3031 = vmatpush3.msra.mxu1 %v3705_v0 }
 0x895   :  { %3038 = vmatprep.mubr.msk.f32.mxu1 %vm3585_vm0, %v3584_v1  ;;  %3032 = vmatprep.subr.mxu1 %v3584_v1 }
 0x896   :  { %3043 = vmatprep.subr.mxu0 %v3584_v1  ;;  %3033 = vmatpush3.msra.mxu1 %v3708_v2 }
 0x897   :  { %3044 = vmatpush3.msra.mxu0 %v3744_v25  ;;  %3034 = vmatprep.subr.mxu1 %v3584_v1 }
 0x898   :  { %3045 = vmatprep.subr.mxu0 %v3584_v1  ;;  %3035 = vmatpush3.msra.mxu1 %v3715_v3 }
 0x899   :  { %3046 = vmatpush3.msra.mxu0 %v3753_v28  ;;  %3036 = vmatprep.subr.mxu1 %v3584_v1 }
 0x89a   :  { %3047 = vmatprep.subr.mxu0 %v3584_v1  ;;  %3037 = vmatpush3.msra.mxu1 %v3721_v4 }
 0x89b   :  { %3048 = vmatpush3.msra.mxu0 %v3761_v30  ;;  %3039 = vmatmul.mubr.msk.f32.vlgmr.msra.gmra.mxu1 %vm181_vm1, %v864_v15  ;;  %v1333_v15 = vld [vmem:[%s1332_s20] sm:$0x1] }
 0x89c   :  { %3052 = vmatprep.subr.mxu1 %v3584_v1  ;;  %3060 = vmatprep.mubr.msk.f32.mxu1 %vm3585_vm0, %v3584_v1 }
 0x89d   :  { %3053 = vmatpush3.msra.mxu1 %v3746_v26  ;;  %3049 = vmatprep.mubr.msk.f32.mxu0 %vm3585_vm0, %v3584_v1 }
 0x89e   :  { %3054 = vmatprep.subr.mxu1 %v3584_v1  ;;  %3063 = vmatprep.subr.mxu0 %v3584_v1 }
 0x89f   :  { %3055 = vmatpush3.msra.mxu1 %v3750_v27 }
 0x8a0   :  { %3056 = vmatprep.subr.mxu1 %v3584_v1 }
 0x8a1   :  { %3057 = vmatpush3.msra.mxu1 %v3756_v29 }
 0x8a2   :  { %3058 = vmatprep.subr.mxu1 %v3584_v1 }
 0x8a3   :  { %3059 = vmatpush3.msra.mxu1 %v3771_v32 }
 0x8a4   :  { %3074 = vmatprep.subr.mxu1 %v3584_v1 }
 0x953   :  { %v1006_v17 = vpop.f32.mrf.mxu0  ;;  %v933_v18 = vpop.f32.mrf.mxu1 }
 0x954   :  { %v937_v20 = vadd.f32 %v933_v18, %v3815_v39  ;;  %v1334_v18 = vadd.f32 %v1333_v15, %v1330_v9 }
 0x955   :  { %v3029_v21 = vpop.f32.mrf.mxu0  ;;  %v3018_v22 = vpop.f32.mrf.mxu1 }
 0x956   :  { %v1010_v33 = vadd.f32 %v1006_v17, %v937_v20 }
 0x958   :  { %3267 = vtanh.f32 %v1010_v33  ;;  %v2768_v41 = vmul.f32 -1.442695, %v1010_v33 }
 0x95b   :  { %v1117_v35 = vpop.f32.mrf.mxu1 }
 0x95c   :  { %v1121_v36 = vadd.f32 %v1117_v35, %v1050_v34 }
 0x95d   :  { %v3040_v37 = vpop.f32.mrf.mxu1 }
 0x95e   :  { %3269 = vtanh.f32 %v1121_v36  ;;  %v2772_v42 = vmul.f32 -1.442695, %v1121_v36 }
 0x95f   :  { %3271 = vpow2.f32 %v2768_v41 }
 0x960   :  { %3273 = vpow2.f32 %v2772_v42 }
 0x965   :  { %v3268_v38 = vpop.eup %3267 }
 0x966   :  { %1020 = vrot.lane.b32.xlu1 %v3268_v38, %s3586_s21 }
 0x96b   :  { %v3270_v40 = vpop.eup %3269 }
 0x96c   :  { %1131 = vrot.lane.b32.xlu0 %v3270_v40, %s3586_s21  ;;  %v3272_v43 = vpop.eup %3271 }
 0x96d   :  { %v1014_v44 = vadd.f32 1.0, %v3272_v43  ;;  %v3274_v45 = vpop.eup %3273 }
 0x96e   :  { %v1125_v46 = vadd.f32 1.0, %v3274_v45 }
 0x96f   :  { %3275 = vrcp.f32 %v1014_v44 }
 0x970   :  { %3277 = vrcp.f32 %v1125_v46 }
 0x97c   :  { %v3276_v47 = vpop.eup %3275 }
 0x97d   :  { %v3278_v50 = vpop.eup %3277  ;;  %v1018_v53 = vmul.f32 %v3276_v47, %v3883_v62 }
 0x97e   :  { %v1129_v56 = vmul.f32 %v3278_v50, %v3887_v6 }
 0x9d8   :  { %v1021_v48 = vpop.permute.xlu1 %1020 }
 0x9d9   :  { %v1023_v49 = vmul.f32 %v3276_v47, %v1021_v48 }
 0x9db   :  { %1025 = vrot.lane.b32.xlu1 %v1023_v49, %s3587_s24 }
 0x9de   :  { %v1132_v51 = vpop.permute.xlu0 %1131 }
 0x9df   :  { %v1134_v52 = vmul.f32 %v3278_v50, %v1132_v51 }
 0x9e1   :  { %1136 = vrot.lane.b32.xlu0 %v1134_v52, %s3587_s24 }
 0xa4d   :  { %v1026_v54 = vpop.permute.xlu1 %1025 }
 0xa4e   :  { %v3935_v55 = vadd.f32 %v1026_v54, %v1018_v53 }
 0xa50   :  { %3279 = vtanh.f32 %v3935_v55 }
 0xa53   :  { %v1137_v57 = vpop.permute.xlu0 %1136 }
 0xa54   :  { %v3939_v58 = vadd.f32 %v1137_v57, %v1129_v56 }
 0xa56   :  { %3281 = vtanh.f32 %v3939_v58 }
 0xa5d   :  { %v3280_v59 = vpop.eup %3279 }
 0xa5e   :  { %1031 = vrot.lane.b32.xlu1 %v3280_v59, %s3586_s21 }
 0xa63   :  { %v3282_v60 = vpop.eup %3281 }
 0xa64   :  { %1142 = vrot.lane.b32.xlu0 %v3282_v60, %s3586_s21 }
 0xad0   :  { %v1032_v61 = vpop.permute.xlu1 %1031 }
 0xad1   :  { %v1034_v62 = vmul.f32 %v3276_v47, %v1032_v61  ;;  %v1617_v61 = vld [vmem:[%s1616_s26] sm:$0x1] }
 0xad3   :  { %v1039_v63 = vrot.slane %v1034_v62, %v3839_v19 }
 0xad5   :  { %1040 = vrot.lane.b32.xlu1 %v1039_v63, %s3587_s24 }
 0xad6   :  { %v1143_v5 = vpop.permute.xlu0 %1142 }
 0xad7   :  { %v1145_v7 = vmul.f32 %v3278_v50, %v1143_v5 }
 0xad9   :  { %1147 = vrot.lane.b32.xlu0 %v1145_v7, %s3587_s24 }
 0xb47   :  { %v1041_v6 = vpop.permute.xlu1 %1040 }
 0xb48   :  { %1043 = vst.msk [vmem:[#allocation2 + $0x2] sm:$0x1] %vm474_vm2, %v1041_v6  ;;  %3061 = vmatmul.mubr.msk.f32.vlgmr.msra.gmra.mxu1 %vm181_vm1, %v1041_v6 }
 0xb49   :  { %3075 = vmatpush3.msra.mxu1 %v3742_v24  ;;  %3082 = vmatprep.mubr.msk.f32.mxu1 %vm3585_vm0, %v3584_v1 }
 0xb4a   :  { %3076 = vmatprep.subr.mxu1 %v3584_v1 }
 0xb4b   :  { %v1148_v8 = vpop.permute.xlu0 %1147  ;;  %3077 = vmatpush3.msra.mxu1 %v3744_v25 }
 0xb4c   :  { %3050 = vmatmul.mubr.msk.f32.vlgmr.msra.gmra.mxu0 %vm181_vm1, %v1148_v8  ;;  %3078 = vmatprep.subr.mxu1 %v3584_v1 }
 0xb4d   :  { %3064 = vmatpush3.msra.mxu0 %v3705_v0  ;;  %3071 = vmatprep.mubr.msk.f32.mxu0 %vm3585_vm0, %v3584_v1 }
 0xb4e   :  { %3065 = vmatprep.subr.mxu0 %v3584_v1  ;;  %3079 = vmatpush3.msra.mxu1 %v3753_v28 }
 0xb4f   :  { %3066 = vmatpush3.msra.mxu0 %v3708_v2  ;;  %3080 = vmatprep.subr.mxu1 %v3584_v1 }
 0xb50   :  { %3067 = vmatprep.subr.mxu0 %v3584_v1  ;;  %3081 = vmatpush3.msra.mxu1 %v3761_v30 }
 0xb51   :  { %3068 = vmatpush3.msra.mxu0 %v3715_v3  ;;  %3096 = vmatprep.subr.mxu1 %v3584_v1 }
 0xb52   :  { %3069 = vmatprep.subr.mxu0 %v3584_v1 }
 0xb53   :  { %3070 = vmatpush3.msra.mxu0 %v3721_v4 }
 0xb54   :  { %3072 = vmatmul.mubr.msk.f32.vlgmr.msra.gmra.mxu0 %vm181_vm1, %v1148_v8  ;;  %3085 = vmatprep.subr.mxu0 %v3584_v1 }
 0xb55   :  { %3086 = vmatpush3.msra.mxu0 %v3746_v26  ;;  %3093 = vmatprep.mubr.msk.f32.mxu0 %vm3585_vm0, %v3584_v1 }
 0xb56   :  { %3087 = vmatprep.subr.mxu0 %v3584_v1 }
 0xb57   :  { %3088 = vmatpush3.msra.mxu0 %v3750_v27 }
 0xb58   :  { %3089 = vmatprep.subr.mxu0 %v3584_v1 }
 0xb59   :  { %3090 = vmatpush3.msra.mxu0 %v3756_v29 }
 0xb5a   :  { %3091 = vmatprep.subr.mxu0 %v3584_v1 }
 0xb5b   :  { %3092 = vmatpush3.msra.mxu0 %v3771_v32 }
 0xb5c   :  { %3107 = vmatprep.subr.mxu0 %v3584_v1 }
 0xc08   :  { %v1290_v10 = vpop.f32.mrf.mxu1 }
 0xc0a   :  { %v3062_v11 = vpop.f32.mrf.mxu1 }
 0xc0c   :  { %v1217_v12 = vpop.f32.mrf.mxu0 }
 0xc0d   :  { %v1221_v13 = vadd.f32 %v1217_v12, %v3815_v39 }
 0xc0e   :  { %v3051_v14 = vpop.f32.mrf.mxu0 }
 0xc0f   :  { %v1294_v17 = vadd.f32 %v1290_v10, %v1221_v13 }
 0xc11   :  { %3283 = vtanh.f32 %v1294_v17  ;;  %v2775_v33 = vmul.f32 -1.442695, %v1294_v17 }
 0xc14   :  { %v1401_v20 = vpop.f32.mrf.mxu0 }
 0xc15   :  { %v1405_v21 = vadd.f32 %v1401_v20, %v1334_v18 }
 0xc16   :  { %v3073_v22 = vpop.f32.mrf.mxu0 }
 0xc17   :  { %3285 = vtanh.f32 %v1405_v21  ;;  %v2779_v34 = vmul.f32 -1.442695, %v1405_v21 }
 0xc18   :  { %3287 = vpow2.f32 %v2775_v33 }
 0xc19   :  { %3289 = vpow2.f32 %v2779_v34 }
 0xc1e   :  { %v3284_v23 = vpop.eup %3283 }
 0xc1f   :  { %1304 = vrot.lane.b32.xlu1 %v3284_v23, %s3586_s21 }
 0xc24   :  { %v3286_v31 = vpop.eup %3285 }
 0xc25   :  { %1415 = vrot.lane.b32.xlu0 %v3286_v31, %s3586_s21  ;;  %v3288_v35 = vpop.eup %3287 }
 0xc26   :  { %v1298_v36 = vadd.f32 1.0, %v3288_v35  ;;  %v3290_v37 = vpop.eup %3289 }
 0xc27   :  { %v1409_v38 = vadd.f32 1.0, %v3290_v37 }
 0xc28   :  { %3291 = vrcp.f32 %v1298_v36 }
 0xc29   :  { %3293 = vrcp.f32 %v1409_v38 }
 0xc35   :  { %v3292_v40 = vpop.eup %3291 }
 0xc36   :  { %v3294_v43 = vpop.eup %3293  ;;  %v1302_v46 = vmul.f32 %v3292_v40, %v3935_v55 }
 0xc37   :  { %v1413_v49 = vmul.f32 %v3294_v43, %v3939_v58 }
 0xc91   :  { %v1305_v41 = vpop.permute.xlu1 %1304 }
 0xc92   :  { %v1307_v42 = vmul.f32 %v3292_v40, %v1305_v41 }
 0xc94   :  { %1309 = vrot.lane.b32.xlu1 %v1307_v42, %s3587_s24 }
 0xc97   :  { %v1416_v44 = vpop.permute.xlu0 %1415 }
 0xc98   :  { %v1418_v45 = vmul.f32 %v3294_v43, %v1416_v44 }
 0xc9a   :  { %1420 = vrot.lane.b32.xlu0 %v1418_v45, %s3587_s24 }
 0xd06   :  { %v1310_v47 = vpop.permute.xlu1 %1309 }
 0xd07   :  { %v3987_v48 = vadd.f32 %v1310_v47, %v1302_v46  ;;  %v4060_v47 = vld [vmem:[#allocation12 + $0x18] sm:$0xff] }
 0xd09   :  { %3295 = vtanh.f32 %v3987_v48 }
 0xd0c   :  { %v1421_v50 = vpop.permute.xlu0 %1420 }
 0xd0d   :  { %v3991_v51 = vadd.f32 %v1421_v50, %v1413_v49  ;;  %v4093_v49 = vld [vmem:[#allocation15 + $0x8] sm:$0xff] }
 0xd0f   :  { %3297 = vtanh.f32 %v3991_v51 }
 0xd16   :  { %v3296_v52 = vpop.eup %3295 }
 0xd17   :  { %1315 = vrot.lane.b32.xlu1 %v3296_v52, %s3586_s21 }
 0xd1c   :  { %v3298_v53 = vpop.eup %3297 }
 0xd1d   :  { %1426 = vrot.lane.b32.xlu0 %v3298_v53, %s3586_s21 }
 0xd89   :  { %v1316_v54 = vpop.permute.xlu1 %1315 }
 0xd8a   :  { %v1318_v55 = vmul.f32 %v3292_v40, %v1316_v54 }
 0xd8c   :  { %v1323_v56 = vrot.slane %v1318_v55, %v3839_v19  ;;  %v1898_v55 = vld [vmem:[%s1897_s4] sm:$0x1] }
 0xd8e   :  { %1324 = vrot.lane.b32.xlu1 %v1323_v56, %s3587_s24  ;;  %v1901_v56 = vld [vmem:[%s1900_s28] sm:$0x1] }
 0xd8f   :  { %v1427_v57 = vpop.permute.xlu0 %1426 }
 0xd90   :  { %v1429_v59 = vmul.f32 %v3294_v43, %v1427_v57 }
 0xd92   :  { %1431 = vrot.lane.b32.xlu0 %v1429_v59, %s3587_s24  ;;  %v1902_v59 = vadd.f32 %v1901_v56, %v1898_v55 }
 0xe00   :  { %v1325_v58 = vpop.permute.xlu1 %1324 }
 0xe01   :  { %1327 = vst.msk [vmem:[#allocation2 + $0x3] sm:$0x1] %vm474_vm2, %v1325_v58  ;;  %3094 = vmatmul.mubr.msk.f32.vlgmr.msra.gmra.mxu0 %vm181_vm1, %v1325_v58 }
 0xe02   :  { %3108 = vmatpush3.msra.mxu0 %v3742_v24  ;;  %3115 = vmatprep.mubr.msk.f32.mxu0 %vm3585_vm0, %v3584_v1 }
 0xe03   :  { %3109 = vmatprep.subr.mxu0 %v3584_v1 }
 0xe04   :  { %v1432_v60 = vpop.permute.xlu0 %1431  ;;  %3110 = vmatpush3.msra.mxu0 %v3744_v25 }
 0xe05   :  { %3083 = vmatmul.mubr.msk.f32.vlgmr.msra.gmra.mxu1 %vm181_vm1, %v1432_v60  ;;  %3111 = vmatprep.subr.mxu0 %v3584_v1 }
 0xe06   :  { %3097 = vmatpush3.msra.mxu1 %v3705_v0  ;;  %3104 = vmatprep.mubr.msk.f32.mxu1 %vm3585_vm0, %v3584_v1 }
 0xe07   :  { %3098 = vmatprep.subr.mxu1 %v3584_v1  ;;  %3112 = vmatpush3.msra.mxu0 %v3753_v28 }
 0xe08   :  { %3099 = vmatpush3.msra.mxu1 %v3708_v2  ;;  %3113 = vmatprep.subr.mxu0 %v3584_v1 }
 0xe09   :  { %3100 = vmatprep.subr.mxu1 %v3584_v1  ;;  %3114 = vmatpush3.msra.mxu0 %v3761_v30 }
 0xe0a   :  { %3101 = vmatpush3.msra.mxu1 %v3715_v3  ;;  %3129 = vmatprep.subr.mxu0 %v3584_v1 }
 0xe0b   :  { %3102 = vmatprep.subr.mxu1 %v3584_v1 }
 0xe0c   :  { %3103 = vmatpush3.msra.mxu1 %v3721_v4 }
 0xe0d   :  { %3105 = vmatmul.mubr.msk.f32.vlgmr.msra.gmra.mxu1 %vm181_vm1, %v1432_v60  ;;  %3118 = vmatprep.subr.mxu1 %v3584_v1 }
 0xe0e   :  { %3119 = vmatpush3.msra.mxu1 %v3746_v26  ;;  %3126 = vmatprep.mubr.msk.f32.mxu1 %vm3585_vm0, %v3584_v1 }
 0xe0f   :  { %3120 = vmatprep.subr.mxu1 %v3584_v1 }
 0xe10   :  { %3121 = vmatpush3.msra.mxu1 %v3750_v27  ;;  %v1614_v27 = vld [vmem:[%s1613_s25] sm:$0x1] }
 0xe11   :  { %3122 = vmatprep.subr.mxu1 %v3584_v1 }
 0xe12   :  { %3123 = vmatpush3.msra.mxu1 %v3756_v29  ;;  %v1618_v29 = vadd.f32 %v1617_v61, %v1614_v27 }
 0xe13   :  { %3124 = vmatprep.subr.mxu1 %v3584_v1 }
 0xe14   :  { %3125 = vmatpush3.msra.mxu1 %v3771_v32 }
 0xe15   :  { %3140 = vmatprep.subr.mxu1 %v3584_v1 }
 0xec1   :  { %v1574_v0 = vpop.f32.mrf.mxu0 }
 0xec3   :  { %v3095_v2 = vpop.f32.mrf.mxu0 }
 0xec5   :  { %v1501_v3 = vpop.f32.mrf.mxu1 }
 0xec6   :  { %v1505_v4 = vadd.f32 %v1501_v3, %v3815_v39 }
 0xec7   :  { %v3084_v26 = vpop.f32.mrf.mxu1 }
 0xec8   :  { %v1578_v62 = vadd.f32 %v1574_v0, %v1505_v4 }
 0xeca   :  { %3299 = vtanh.f32 %v1578_v62  ;;  %v2782_v10 = vmul.f32 -1.442695, %v1578_v62 }
 0xecd   :  { %v1685_v63 = vpop.f32.mrf.mxu1 }
 0xece   :  { %v1689_v5 = vadd.f32 %v1685_v63, %v1618_v29 }
 0xecf   :  { %v3106_v7 = vpop.f32.mrf.mxu1 }
 0xed0   :  { %3301 = vtanh.f32 %v1689_v5  ;;  %v2786_v11 = vmul.f32 -1.442695, %v1689_v5 }
 0xed1   :  { %3303 = vpow2.f32 %v2782_v10 }
 0xed2   :  { %3305 = vpow2.f32 %v2786_v11 }
 0xed7   :  { %v3300_v6 = vpop.eup %3299 }
 0xed8   :  { %1588 = vrot.lane.b32.xlu1 %v3300_v6, %s3586_s21 }
 0xedd   :  { %v3302_v8 = vpop.eup %3301 }
 0xede   :  { %1699 = vrot.lane.b32.xlu0 %v3302_v8, %s3586_s21  ;;  %v3304_v12 = vpop.eup %3303 }
 0xedf   :  { %v1582_v13 = vadd.f32 1.0, %v3304_v12  ;;  %v3306_v14 = vpop.eup %3305 }
 0xee0   :  { %v1693_v9 = vadd.f32 1.0, %v3306_v14 }
 0xee1   :  { %3307 = vrcp.f32 %v1582_v13 }
 0xee2   :  { %3309 = vrcp.f32 %v1693_v9 }
 0xeee   :  { %v3308_v15 = vpop.eup %3307 }
 0xeef   :  { %v3310_v20 = vpop.eup %3309  ;;  %v1586_v23 = vmul.f32 %v3308_v15, %v3987_v48  ;;  %v4078_v48 = vld [vmem:[#allocation12] sm:$0xff] }
 0xef0   :  { %v1697_v34 = vmul.f32 %v3310_v20, %v3991_v51 }
 0xf4a   :  { %v1589_v17 = vpop.permute.xlu1 %1588 }
 0xf4b   :  { %v1591_v18 = vmul.f32 %v3308_v15, %v1589_v17 }
 0xf4d   :  { %1593 = vrot.lane.b32.xlu1 %v1591_v18, %s3587_s24 }
 0xf50   :  { %v1700_v21 = vpop.permute.xlu0 %1699 }
 0xf51   :  { %v1702_v22 = vmul.f32 %v3310_v20, %v1700_v21 }
 0xf53   :  { %1704 = vrot.lane.b32.xlu0 %v1702_v22, %s3587_s24 }
 0xfbf   :  { %v1594_v31 = vpop.permute.xlu1 %1593 }
 0xfc0   :  { %v4039_v33 = vadd.f32 %v1594_v31, %v1586_v23  ;;  %v3366_v31 = vld [vmem:[#allocation13 + $0x18] sm:$0xff] }
 0xfc2   :  { %3311 = vtanh.f32 %v4039_v33 }
 0xfc5   :  { %v1705_v35 = vpop.permute.xlu0 %1704 }
 0xfc6   :  { %v4043_v36 = vadd.f32 %v1705_v35, %v1697_v34  ;;  %v3367_v34 = vld [vmem:[#allocation13 + $0x10] sm:$0xff]  ;;  %v3368_v35 = vld [vmem:[#allocation13 + $0x8] sm:$0xff] }
 0xfc8   :  { %3313 = vtanh.f32 %v4043_v36 }
 0xfcf   :  { %v3312_v37 = vpop.eup %3311 }
 0xfd0   :  { %1599 = vrot.lane.b32.xlu1 %v3312_v37, %s3586_s21  ;;  %v3370_v37 = vld [vmem:[#allocation15] sm:$0xff] }
 0xfd5   :  { %v3314_v38 = vpop.eup %3313 }
 0xfd6   :  { %1710 = vrot.lane.b32.xlu0 %v3314_v38, %s3586_s21 }
0x1042   :  { %v1600_v40 = vpop.permute.xlu1 %1599 }
0x1043   :  { %v1602_v41 = vmul.f32 %v3308_v15, %v1600_v40 }
0x1045   :  { %v1607_v42 = vrot.slane %v1602_v41, %v3839_v19 }
0x1047   :  { %1608 = vrot.lane.b32.xlu1 %v1607_v42, %s3587_s24  ;;  %v4148_v42 = vld [vmem:[%s4220_s8] sm:$0x1] }
0x1048   :  { %v1711_v43 = vpop.permute.xlu0 %1710 }
0x1049   :  { %v1713_v44 = vmul.f32 %v3310_v20, %v1711_v43 }
0x104b   :  { %1715 = vrot.lane.b32.xlu0 %v1713_v44, %s3587_s24 }
0x10b9   :  { %v1609_v45 = vpop.permute.xlu1 %1608 }
0x10ba   :  { %1611 = vst.msk [vmem:[#allocation2 + $0x4] sm:$0x1] %vm474_vm2, %v1609_v45  ;;  %3127 = vmatmul.mubr.msk.f32.vlgmr.msra.gmra.mxu1 %vm181_vm1, %v1609_v45  ;;  %v2182_v45 = vld [vmem:[%s2181_s10] sm:$0x1] }
0x10bb   :  { %3141 = vmatpush3.msra.mxu1 %v3742_v24  ;;  %3148 = vmatprep.mubr.msk.f32.mxu1 %vm3585_vm0, %v3584_v1  ;;  %v4067_v24 = vld [vmem:[#allocation12 + $0x10] sm:$0xff] }
0x10bc   :  { %3142 = vmatprep.subr.mxu1 %v3584_v1 }
0x10bd   :  { %v1716_v46 = vpop.permute.xlu0 %1715  ;;  %3143 = vmatpush3.msra.mxu1 %v3744_v25  ;;  %v4073_v25 = vld [vmem:[#allocation12 + $0x8] sm:$0xff] }
0x10be   :  { %3116 = vmatmul.mubr.msk.f32.vlgmr.msra.gmra.mxu0 %vm181_vm1, %v1716_v46  ;;  %3144 = vmatprep.subr.mxu1 %v3584_v1 }
0x10bf   :  { %3130 = vmatpush3.msra.mxu0 %v4060_v47  ;;  %3137 = vmatprep.mubr.msk.f32.mxu0 %vm3585_vm0, %v3584_v1 }
0x10c0   :  { %3131 = vmatprep.subr.mxu0 %v3584_v1  ;;  %3145 = vmatpush3.msra.mxu1 %v3753_v28  ;;  %v4083_v28 = vld [vmem:[#allocation15 + $0x18] sm:$0xff] }
0x10c1   :  { %3132 = vmatpush3.msra.mxu0 %v4067_v24  ;;  %3146 = vmatprep.subr.mxu1 %v3584_v1 }
0x10c2   :  { %3133 = vmatprep.subr.mxu0 %v3584_v1  ;;  %3147 = vmatpush3.msra.mxu1 %v3761_v30  ;;  %v4089_v30 = vld [vmem:[#allocation15 + $0x10] sm:$0xff] }
0x10c3   :  { %3134 = vmatpush3.msra.mxu0 %v4073_v25  ;;  %3162 = vmatprep.subr.mxu1 %v3584_v1 }
0x10c4   :  { %3135 = vmatprep.subr.mxu0 %v3584_v1 }
0x10c5   :  { %3136 = vmatpush3.msra.mxu0 %v4078_v48 }
0x10c6   :  { %3138 = vmatmul.mubr.msk.f32.vlgmr.msra.gmra.mxu0 %vm181_vm1, %v1716_v46  ;;  %3151 = vmatprep.subr.mxu0 %v3584_v1  ;;  %v2185_v46 = vld [vmem:[%s2184_s5] sm:$0x1] }
0x10c7   :  { %3152 = vmatpush3.msra.mxu0 %v4083_v28  ;;  %3159 = vmatprep.mubr.msk.f32.mxu0 %vm3585_vm0, %v3584_v1 }
0x10c8   :  { %3153 = vmatprep.subr.mxu0 %v3584_v1 }
0x10c9   :  { %3154 = vmatpush3.msra.mxu0 %v4089_v30 }
0x10ca   :  { %3155 = vmatprep.subr.mxu0 %v3584_v1 }
0x10cb   :  { %3156 = vmatpush3.msra.mxu0 %v4093_v49 }
0x10cc   :  { %3157 = vmatprep.subr.mxu0 %v3584_v1 }
0x10cd   :  { %3158 = vmatpush3.msra.mxu0 %v3771_v32 }
0x10ce   :  { %3173 = vmatprep.subr.mxu0 %v3584_v1 }
0x117a   :  { %v1858_v50 = vpop.f32.mrf.mxu1 }
0x117c   :  { %v3128_v51 = vpop.f32.mrf.mxu1 }
0x117e   :  { %v1785_v52 = vpop.f32.mrf.mxu0 }
0x117f   :  { %v1789_v53 = vadd.f32 %v1785_v52, %v3815_v39 }
0x1180   :  { %v3117_v54 = vpop.f32.mrf.mxu0 }
0x1181   :  { %v1862_v57 = vadd.f32 %v1858_v50, %v1789_v53 }
0x1183   :  { %3315 = vtanh.f32 %v1862_v57  ;;  %v2789_v3 = vmul.f32 -1.442695, %v1862_v57 }
0x1186   :  { %v1969_v58 = vpop.f32.mrf.mxu0 }
0x1187   :  { %v1973_v60 = vadd.f32 %v1969_v58, %v1902_v59 }
0x1188   :  { %v3139_v32 = vpop.f32.mrf.mxu0 }
0x1189   :  { %3317 = vtanh.f32 %v1973_v60  ;;  %v2793_v39 = vmul.f32 -1.442695, %v1973_v60 }
0x118a   :  { %3319 = vpow2.f32 %v2789_v3 }
0x118b   :  { %3321 = vpow2.f32 %v2793_v39 }
0x1190   :  { %v3316_v0 = vpop.eup %3315 }
0x1191   :  { %1872 = vrot.lane.b32.xlu1 %v3316_v0, %s3586_s21 }
0x1196   :  { %v3318_v2 = vpop.eup %3317 }
0x1197   :  { %1983 = vrot.lane.b32.xlu0 %v3318_v2, %s3586_s21  ;;  %v3320_v4 = vpop.eup %3319 }
0x1198   :  { %v1866_v26 = vadd.f32 1.0, %v3320_v4  ;;  %v3322_v27 = vpop.eup %3321 }
0x1199   :  { %v1977_v61 = vadd.f32 1.0, %v3322_v27 }
0x119a   :  { %3323 = vrcp.f32 %v1866_v26 }
0x119b   :  { %3325 = vrcp.f32 %v1977_v61 }
0x11a7   :  { %v3324_v62 = vpop.eup %3323 }
0x11a8   :  { %v3326_v5 = vpop.eup %3325  ;;  %v1870_v8 = vmul.f32 %v3324_v62, %v4039_v33 }
0x11a9   :  { %v1981_v12 = vmul.f32 %v3326_v5, %v4043_v36  ;;  %v3369_v36 = vld [vmem:[#allocation13] sm:$0xff] }
0x1203   :  { %v1873_v29 = vpop.permute.xlu1 %1872 }
0x1204   :  { %v1875_v63 = vmul.f32 %v3324_v62, %v1873_v29 }
0x1206   :  { %1877 = vrot.lane.b32.xlu1 %v1875_v63, %s3587_s24 }
0x1209   :  { %v1984_v7 = vpop.permute.xlu0 %1983 }
0x120a   :  { %v1986_v6 = vmul.f32 %v3326_v5, %v1984_v7 }
0x120c   :  { %1988 = vrot.lane.b32.xlu0 %v1986_v6, %s3587_s24 }
0x1278   :  { %v1878_v10 = vpop.permute.xlu1 %1877 }
0x1279   :  { %v4105_v11 = vadd.f32 %v1878_v10, %v1870_v8 }
0x127b   :  { %3327 = vtanh.f32 %v4105_v11 }
0x127e   :  { %v1989_v13 = vpop.permute.xlu0 %1988 }
0x127f   :  { %v4109_v14 = vadd.f32 %v1989_v13, %v1981_v12 }
0x1281   :  { %3329 = vtanh.f32 %v4109_v14 }
0x1288   :  { %v3328_v9 = vpop.eup %3327 }
0x1289   :  { %1883 = vrot.lane.b32.xlu1 %v3328_v9, %s3586_s21 }
0x128e   :  { %v3330_v15 = vpop.eup %3329 }
0x128f   :  { %1994 = vrot.lane.b32.xlu0 %v3330_v15, %s3586_s21 }
0x12fb   :  { %v1884_v17 = vpop.permute.xlu1 %1883 }
0x12fc   :  { %v1886_v18 = vmul.f32 %v3324_v62, %v1884_v17 }
0x12fe   :  { %v1891_v20 = vrot.slane %v1886_v18, %v3839_v19 }
0x1300   :  { %1892 = vrot.lane.b32.xlu1 %v1891_v20, %s3587_s24 }
0x1301   :  { %v1995_v21 = vpop.permute.xlu0 %1994 }
0x1302   :  { %v1997_v22 = vmul.f32 %v3326_v5, %v1995_v21 }
0x1304   :  { %1999 = vrot.lane.b32.xlu0 %v1997_v22, %s3587_s24 }
0x1372   :  { %v1893_v23 = vpop.permute.xlu1 %1892 }
0x1373   :  { %1895 = vst.msk [vmem:[#allocation2 + $0x5] sm:$0x1] %vm474_vm2, %v1893_v23  ;;  %3160 = vmatmul.mubr.msk.f32.vlgmr.msra.gmra.mxu0 %vm181_vm1, %v1893_v23 }
0x1374   :  { %3174 = vmatpush3.msra.mxu0 %v3366_v31  ;;  %3181 = vmatprep.mubr.msk.f32.mxu0 %vm3585_vm0, %v3584_v1 }
0x1375   :  { %3175 = vmatprep.subr.mxu0 %v3584_v1 }
0x1376   :  { %v2000_v33 = vpop.permute.xlu0 %1999  ;;  %3176 = vmatpush3.msra.mxu0 %v3367_v34 }
0x1377   :  { %3149 = vmatmul.mubr.msk.f32.vlgmr.msra.gmra.mxu1 %vm181_vm1, %v2000_v33  ;;  %3177 = vmatprep.subr.mxu0 %v3584_v1 }
0x1378   :  { %3163 = vmatpush3.msra.mxu1 %v4060_v47  ;;  %3170 = vmatprep.mubr.msk.f32.mxu1 %vm3585_vm0, %v3584_v1 }
0x1379   :  { %3164 = vmatprep.subr.mxu1 %v3584_v1  ;;  %3178 = vmatpush3.msra.mxu0 %v3368_v35 }
0x137a   :  { %3165 = vmatpush3.msra.mxu1 %v4067_v24  ;;  %3179 = vmatprep.subr.mxu0 %v3584_v1  ;;  %v2186_v24 = vadd.f32 %v2185_v46, %v2182_v45  ;;  %v2492_v45 = vld [vmem:[#allocation16 + $0x28] sm:$0xff] }
0x137b   :  { %3166 = vmatprep.subr.mxu1 %v3584_v1  ;;  %3180 = vmatpush3.msra.mxu0 %v3369_v36  ;;  %v2497_v36 = vld [vmem:[#allocation16 + $0x50] sm:$0xff]  ;;  %v2488_v46 = vld [vmem:[#allocation16 + $0x8] sm:$0xff] }
0x137c   :  { %3167 = vmatpush3.msra.mxu1 %v4073_v25  ;;  %2543 = vmatprep.subr.mxu0 %v2497_v36 }
0x137d   :  { %3168 = vmatprep.subr.mxu1 %v3584_v1 }
0x137e   :  { %3169 = vmatpush3.msra.mxu1 %v4078_v48 }
0x137f   :  { %3171 = vmatmul.mubr.msk.f32.vlgmr.msra.gmra.mxu1 %vm181_vm1, %v2000_v33  ;;  %3184 = vmatprep.subr.mxu1 %v3584_v1 }
0x1380   :  { %3185 = vmatpush3.msra.mxu1 %v4083_v28  ;;  %3192 = vmatprep.mubr.msk.f32.mxu1 %vm3585_vm0, %v3584_v1 }
0x1381   :  { %3186 = vmatprep.subr.mxu1 %v3584_v1 }
0x1382   :  { %3187 = vmatpush3.msra.mxu1 %v4089_v30 }
0x1383   :  { %3188 = vmatprep.subr.mxu1 %v3584_v1 }
0x1384   :  { %3189 = vmatpush3.msra.mxu1 %v4093_v49 }
0x1385   :  { %3190 = vmatprep.subr.mxu1 %v3584_v1 }
0x1386   :  { %3191 = vmatpush3.msra.mxu1 %v3370_v37  ;;  %v2496_v37 = vld [vmem:[#allocation16 + $0x48] sm:$0xff] }
0x1387   :  { %3195 = vmatprep.subr.mxu1 %v3584_v1 }
0x1433   :  { %v2142_v38 = vpop.f32.mrf.mxu0 }
0x1435   :  { %v3161_v40 = vpop.f32.mrf.mxu0 }
0x1436   :  { %v2494_v40 = vld [vmem:[#allocation16 + $0x38] sm:$0xff] }
0x1437   :  { %v2069_v41 = vpop.f32.mrf.mxu1 }
0x1438   :  { %v2073_v43 = vadd.f32 %v4148_v42, %v2069_v41  ;;  %v2493_v41 = vld [vmem:[#allocation16 + $0x30] sm:$0xff] }
0x1439   :  { %v3150_v44 = vpop.f32.mrf.mxu1 }
0x143a   :  { %v2146_v47 = vadd.f32 %v2142_v38, %v2073_v43  ;;  %v2498_v38 = vld [vmem:[#allocation16 + $0x58] sm:$0xff]  ;;  %v2491_v43 = vld [vmem:[#allocation16 + $0x20] sm:$0xff] }
0x143b   :  { %v2490_v44 = vld [vmem:[#allocation16 + $0x18] sm:$0xff] }
0x143c   :  { %3331 = vtanh.f32 %v2146_v47  ;;  %v2796_v50 = vmul.f32 -1.442695, %v2146_v47  ;;  %v2487_v47 = vld [vmem:[#allocation16] sm:$0xff] }
0x143f   :  { %v2253_v25 = vpop.f32.mrf.mxu1 }
0x1440   :  { %v2257_v48 = vadd.f32 %v2253_v25, %v2186_v24  ;;  %v2489_v24 = vld [vmem:[#allocation16 + $0x10] sm:$0xff] }
0x1441   :  { %v3172_v28 = vpop.f32.mrf.mxu1 }
0x1442   :  { %3333 = vtanh.f32 %v2257_v48  ;;  %v2800_v51 = vmul.f32 -1.442695, %v2257_v48  ;;  %v2660_v48 = vld [vmem:[%s4214_s2] sm:$0xff] }
0x1443   :  { %3335 = vpow2.f32 %v2796_v50  ;;  %vm2661_vm3 = vcmp.eq.s32.totalorder %v2660_v48, 0  ;;  %vm2669_vm4 = vcmp.eq.s32.totalorder %v2660_v48, 1  ;;  %vm2677_vm5 = vcmp.eq.s32.totalorder %v2660_v48, 2 }
0x1444   :  { %3337 = vpow2.f32 %v2800_v51 }
0x1449   :  { %v3332_v30 = vpop.eup %3331 }
0x144a   :  { %2156 = vrot.lane.b32.xlu0 %v3332_v30, %s3586_s21  ;;  %v3588_v30 = vmov 0  }
0x144b   :  { %3226 = vset.pattern.permute.xlu1 %v3588_v30  ;;  %3225 = vset.pattern.permute.xlu0 %v3588_v30  ;;  %v2678_v51 = vsel %vm2677_vm5, 1, %v3588_v30 }
0x144f   :  { %v3334_v49 = vpop.eup %3333 }
0x1450   :  { %2267 = vrot.lane.b32.xlu1 %v3334_v49, %s3586_s21  ;;  %v3336_v52 = vpop.eup %3335  ;;  %v2662_v49 = vsel %vm2661_vm3, 1, %v3588_v30 }
0x1451   :  { %v2150_v53 = vadd.f32 1.0, %v3336_v52  ;;  %v3338_v54 = vpop.eup %3337 }
0x1452   :  { %v2261_v55 = vadd.f32 1.0, %v3338_v54  ;;  %v2499_v54 = vld [vmem:[%s4224_s12] sm:$0x7]  ;;  %s3589_s12 = smov [#allocation19]  }
0x1453   :  { %3339 = vrcp.f32 %v2150_v53  ;;  %s2713_s1 = sshll.u32 %s3589_s12, 4  ;;  %s2714_s1 = int_to_ptr.vmem [resolvable:$true] %s2713_s1 }
0x1454   :  { %3341 = vrcp.f32 %v2261_v55  ;;  %s3520_s16 = scalar_lea.vmem %s2714_s1, 32  ;;  %p3521_p13 = scmp.lt.s32.totalorder %s2714_s1, %s2714_s1 }
0x1460   :  { %v3340_v56 = vpop.eup %3339 }
0x1461   :  { %v3342_v58 = vpop.eup %3341  ;;  %v2154_v0 = vmul.f32 %v3340_v56, %v4105_v11 }
0x1462   :  { %v2265_v39 = vmul.f32 %v3342_v58, %v4109_v14 }
0x14bc   :  { %v2157_v57 = vpop.permute.xlu0 %2156 }
0x14bd   :  { %v2159_v59 = vmul.f32 %v3340_v56, %v2157_v57  ;;  %v2507_v57 = vsub.s32 1, %v3835_v16 }
0x14bf   :  { %2161 = vrot.lane.b32.xlu0 %v2159_v59, %s3587_s24  ;;  %v2504_v59 = vrot.slane %v2499_v54, %v3839_v19 }
0x14c2   :  { %v2268_v60 = vpop.permute.xlu1 %2267 }
0x14c3   :  { %v2270_v32 = vmul.f32 %v3342_v58, %v2268_v60 }
0x14c5   :  { %2272 = vrot.lane.b32.xlu1 %v2270_v32, %s3587_s24  ;;  %v2508_v32 = vrot.slane %v2499_v54, %v2507_v57 }
0x1531   :  { %v2162_v2 = vpop.permute.xlu0 %2161 }
0x1532   :  { %v2164_v3 = vadd.f32 %v2162_v2, %v2154_v0 }
0x1534   :  { %3343 = vtanh.f32 %v2164_v3 }
0x1537   :  { %v2273_v4 = vpop.permute.xlu1 %2272 }
0x1538   :  { %v4157_v26 = vadd.f32 %v2273_v4, %v2265_v39 }
0x153a   :  { %3345 = vtanh.f32 %v4157_v26 }
0x1541   :  { %v3344_v27 = vpop.eup %3343 }
0x1542   :  { %2167 = vrot.lane.b32.xlu0 %v3344_v27, %s3586_s21 }
0x1547   :  { %v3346_v61 = vpop.eup %3345 }
0x1548   :  { %2278 = vrot.lane.b32.xlu1 %v3346_v61, %s3586_s21 }
0x15b4   :  { %v2168_v62 = vpop.permute.xlu0 %2167 }
0x15b5   :  { %v2170_v29 = vmul.f32 %v3340_v56, %v2168_v62  ;;  %v2511_v56 = vsub.s32 2, %v3835_v16 }
0x15b7   :  { %v2175_v63 = vrot.slane %v2170_v29, %v3839_v19 }
0x15b9   :  { %2176 = vrot.lane.b32.xlu1 %v2175_v63, %s3587_s24 }
0x15ba   :  { %v2279_v5 = vpop.permute.xlu1 %2278 }
0x15bb   :  { %v2281_v7 = vmul.f32 %v3342_v58, %v2279_v5  ;;  %v2512_v58 = vrot.slane %v2499_v54, %v2511_v56 }
0x15bd   :  { %2283 = vrot.lane.b32.xlu0 %v2281_v7, %s3587_s24 }
0x162b   :  { %v2177_v6 = vpop.permute.xlu1 %2176 }
0x162c   :  { %2179 = vst.msk [vmem:[#allocation2 + $0x6] sm:$0x1] %vm474_vm2, %v2177_v6  ;;  %3193 = vmatmul.mubr.msk.f32.vlgmr.msra.gmra.mxu1 %vm181_vm1, %v2177_v6 }
0x162d   :  { %3203 = vmatprep.mubr.msk.f32.mxu1 %vm3585_vm0, %v3584_v1  ;;  %3196 = vmatpush3.msra.mxu1 %v2498_v38 }
0x162e   :  { %3197 = vmatprep.subr.mxu1 %v3584_v1 }
0x162f   :  { %v4169_v8 = vpop.permute.xlu0 %2283 }
0x1630   :  { %3182 = vmatmul.mubr.msk.f32.vlgmr.msra.gmra.mxu0 %vm181_vm1, %v4169_v8 }
0x1631   :  { %2583 = vmatprep.mubr.f32.mxu0 %v3584_v1  ;;  %2544 = vmatpush1.msra.mxu0 %v2496_v37 }
0x1632   :  { %2545 = vmatprep.subr.mxu0 %v2494_v40 }
0x1633   :  { %2546 = vmatpush1.msra.mxu0 %v2493_v41 }
0x1634   :  { %2547 = vmatprep.subr.mxu0 %v2491_v43 }
0x1635   :  { %2548 = vmatpush1.msra.mxu0 %v2490_v44 }
0x1636   :  { %2549 = vmatprep.subr.mxu0 %v2488_v46 }
0x1637   :  { %2550 = vmatpush1.msra.mxu0 %v2487_v47 }
0x16ec   :  { %v2426_v10 = vpop.f32.mrf.mxu1 }
0x16ee   :  { %v3194_v11 = vpop.f32.mrf.mxu1 }
0x16f0   :  { %v2353_v12 = vpop.f32.mrf.mxu0 }
0x16f1   :  { %v2357_v13 = vadd.f32 %v4148_v42, %v2353_v12  ;;  %v2495_v42 = vld [vmem:[#allocation16 + $0x40] sm:$0xff] }
0x16f2   :  { %v3183_v14 = vpop.f32.mrf.mxu0  ;;  %3198 = vmatpush3.msra.mxu1 %v2495_v42 }
0x16f3   :  { %v2430_v9 = vadd.f32 %v2426_v10, %v2357_v13  ;;  %3199 = vmatprep.subr.mxu1 %v3584_v1 }
0x16f4   :  { %3200 = vmatpush3.msra.mxu1 %v2492_v45 }
0x16f5   :  { %3347 = vtanh.f32 %v2430_v9  ;;  %v2803_v17 = vmul.f32 -1.442695, %v2430_v9  ;;  %3201 = vmatprep.subr.mxu1 %v3584_v1  ;;  %v2670_v1 = vsel %vm2669_vm4, 1, %v3588_v30 }
0x16f6   :  { %3202 = vmatpush3.msra.mxu1 %v2489_v24 }
0x16f7   :  { %3349 = vpow2.f32 %v2803_v17 }
0x1702   :  { %v3348_v15 = vpop.eup %3347 }
0x1703   :  { %2440 = vrot.lane.b32.xlu0 %v3348_v15, %s3586_s21 }
0x1704   :  { %v3350_v18 = vpop.eup %3349 }
0x1705   :  { %v2434_v20 = vadd.f32 1.0, %v3350_v18 }
0x1707   :  { %3351 = vrcp.f32 %v2434_v20 }
0x1714   :  { %v3352_v21 = vpop.eup %3351 }
0x1715   :  { %v2438_v31 = vmul.f32 %v3352_v21, %v2164_v3 }
0x1775   :  { %v2441_v22 = vpop.permute.xlu0 %2440 }
0x1776   :  { %v2443_v23 = vmul.f32 %v3352_v21, %v2441_v22 }
0x1778   :  { %2445 = vrot.lane.b32.xlu1 %v2443_v23, %s3587_s24 }
0x17ea   :  { %v2446_v33 = vpop.permute.xlu1 %2445 }
0x17eb   :  { %v4177_v34 = vadd.f32 %v2446_v33, %v2438_v31 }
0x17ed   :  { %3353 = vtanh.f32 %v4177_v34  ;;  %v2476_v6 = vrot.slane %v4177_v34, %v3839_v19 }
0x17fa   :  { %v3354_v35 = vpop.eup %3353 }
0x17fb   :  { %2451 = vrot.lane.b32.xlu0 %v3354_v35, %s3586_s21 }
0x17ff   :  { %2664 = vperm.xlu0 %3225, %v2662_v49  }
0x186d   :  { %v2452_v25 = vpop.permute.xlu0 %2451 }
0x186e   :  { %v2454_v28 = vmul.f32 %v3352_v21, %v2452_v25 }
0x1870   :  { %v2459_v50 = vrot.slane %v2454_v28, %v3839_v19 }
0x1872   :  { %2460 = vrot.lane.b32.xlu1 %v2459_v50, %s3587_s24 }
0x1876   :  { %2672 = vperm.xlu1 %3226, %v2670_v1  }
0x187a   :  { %2680 = vperm.xlu1 %3226, %v2678_v51   ;;  %v2665_v60 = vpop.permute.xlu0 %2664 }
0x187b   :  { %vm2666_vm6 = vcmp.eq.s32.totalorder %v2665_v60, 1 }
0x18e4   :  { %v2461_v52 = vpop.permute.xlu1 %2460 }
0x18e5   :  { %2463 = vst.msk [vmem:[#allocation2 + $0x7] sm:$0x1] %vm474_vm2, %v2461_v52 }
0x18ec   :  { %v2486_v53 = vld [vmem:[#allocation2] sm:$0xff] }
0x18ed   :  { %2804 = vmatmul.mubr.msk.f32.vlgmr.msra.gmra.mxu0 %vm181_vm1, %v2486_v53  ;;  %3204 = vmatmul.mubr.msk.f32.vlgmr.msra.gmra.mxu1 %vm181_vm1, %v2486_v53 }
0x18f1   :  { %v2673_v55 = vpop.permute.xlu1 %2672 }
0x18f2   :  { %vm2674_vm7 = vcmp.eq.s32.totalorder %v2673_v55, 1 }
0x18f5   :  { %v2681_v39 = vpop.permute.xlu1 %2680 }
0x18f6   :  { %vm2682_vm8 = vcmp.eq.s32.totalorder %v2681_v39, 1 }
0x19ad   :  { %v2585_v0 = vpop.f32.mrf.mxu0  ;;  %v2656_v2 = vpop.f32.mrf.mxu1 }
0x19ae   :  { %v2586_v3 = vadd.f32 %v2585_v0, %v2504_v59  ;;  %v2657_v61 = vadd.f32 %v2656_v2, %v2512_v58 }
0x19af   :  { %v2587_v4 = vpop.f32.mrf.mxu0  ;;  %v3205_v27 = vpop.f32.mrf.mxu1 }
0x19b0   :  { %v2588_v62 = vadd.f32 %v2587_v4, %v2508_v32  ;;  %v2667_v29 = vsel %vm2666_vm6, %v2586_v3, 0.0  ;;  %v2683_v16 = vsel %vm2682_vm8, %v2657_v61, 0.0 }
0x19b2   :  { %v2675_v63 = vsel %vm2674_vm7, %v2588_v62, 0.0 }
0x19b3   :  { %v2676_v5 = vadd.f32 %v2675_v63, %v2667_v29 }
0x19b5   :  { %v2684_v7 = vadd.f32 %v2683_v16, %v2676_v5 }
0x19b7   :  { %2685 = vmax.xlane.f32.xlu0 %v2684_v7 }
0x19cd   :  { %2465 = vrot.lane.b32.xlu0 %v2459_v50, %s3586_s21 }
0x19d1   :  { %2477 = vrot.lane.b32.xlu0 %v2476_v6, %s3586_s21  ;;  %s3516_s21 = scalar_lea.vmem %s2714_s1, 16 }
0x19d2   :  { %p3517_p12 = scmp.ne.s32.totalorder %s2714_s1, %s3516_s21  ;;  %p3522_p0 = scmp.lt.s32.totalorder %s3520_s16, %s3516_s21 }
0x19d4   :  { %p3523_p1 = por %p3522_p0, %p3521_p13 }
0x19d6   :  { %p3524_p2 = pnand %p3523_p1, %p3517_p12 }
0x1a40   :  { %v2686_v10 = vpop.xlane.xlu0 %2685 }
0x1a41   :  { %v2687_v11 = vsub.f32 %v2684_v7, %v2686_v10 }
0x1a43   :  { %v2688_v12 = vmul.f32 1.442695, %v2687_v11 }
0x1a44   :  { %v2466_v14 = vpop.permute.xlu0 %2465 }
0x1a45   :  { %3355 = vpow2.f32 %v2688_v12  ;;  %v2480_v19 = vsel %vm181_vm1, %v4169_v8, %v2466_v14 }
0x1a48   :  { %v2478_v17 = vpop.permute.xlu0 %2477 }
0x1a52   :  { %v3356_v13 = vpop.eup %3355 }
0x1a53   :  { %2690 = vadd.xlane.f32.xlu1 %v3356_v13 }
0x1a64   :  { %2469 = vrot.lane.b32.xlu1 %v4157_v26, %s3587_s24 }
0x1adc   :  { %v2691_v9 = vpop.xlane.xlu1 %2690 }
0x1add   :  { %3357 = vlog2.f32 %v2691_v9 }
0x1ae0   :  { %v2470_v15 = vpop.permute.xlu1 %2469 }
0x1ae1   :  { %v2482_v18 = vsel %vm2481_vm9, %v2480_v19, %v2470_v15 }
0x1ae2   :  { %v2484_v20 = vsel %vm2483_vm10, %v2482_v18, %v2478_v17 }
0x1ae3   :  { %2485 = vst [vmem:[#allocation19] sm:$0x1] %v2484_v20 }
0x1ae4   :  { %3527 = shalt.err (!%p3524_p2)
}
0x1ae5   :  { %2716 = dma.vmem_to_hbm [thread:$0]  %s2714_s1, 16, %s4226_s14, [#allocation20]  }
0x1ae6   :  { %s3590_s11 = smov [#allocation18]  }
0x1ae7   :  { %s2703_s18 = sshll.u32 %s3590_s11, 4  ;;  %s2704_s18 = int_to_ptr.vmem [resolvable:$true] %s2703_s18 }
0x1ae8   :  { %s3536_s19 = scalar_lea.vmem %s2704_s18, 128  ;;  %p3541_p4 = scmp.lt.s32.totalorder %s2704_s18, %s2704_s18 }
0x1ae9   :  { %p3537_p3 = scmp.ne.s32.totalorder %s2704_s18, %s3536_s19  ;;  %p3542_p5 = scmp.lt.s32.totalorder %s3536_s19, %s3536_s19 }
0x1aea   :  { %v3358_v26 = vpop.eup %3357 }
0x1aeb   :  { %v2693_v8 = vmul.f32 0.6931472, %v3358_v26  ;;  %p3543_p6 = por %p3542_p5, %p3541_p4 }
0x1aed   :  { %v2694_v21 = vadd.f32 %v2693_v8, %v2686_v10  ;;  %p3544_p7 = pnand %p3543_p6, %p3537_p3 }
0x1aef   :  { %v2695_v22 = vsub.f32 %v2684_v7, %v2694_v21 }
0x1af1   :  { %2696 = vst [vmem:[#allocation18] sm:$0xff] %v2695_v22 }
0x1af2   :  { %3547 = shalt.err (!%p3544_p7)
}
0x1af3   :  { %2706 = dma.vmem_to_hbm [thread:$0]  %s2704_s18, 128, %s4225_s13, [#allocation5]  }
0x1af4   :  { %3568 = dma.done.wait [#allocation5], 128  }
0x1af5   :  { %3569 = vsyncadd [#allocation5], 4294967168 }
0x1af6   :  { %3570 = dma.done.wait [#allocation20], 16  }
0x1af7   :  { %3571 = vsyncadd [#allocation20], 4294967280 }
0x1af8   :  { %2723 = vsyncpa [#allocation4], 1 }
0x1af9   :  { %2724 = vsyncpa [#allocation11], 1 }
0x1afa   :  { %2725 = vsyncpa [#allocation14], 1 }
0x1afb   :  { %2726 = vsyncpa [#allocation17], 1 }
0x1afc   :  { %2727 = vsyncpa [#allocation5], 1 }
0x1afd   :  { %2728 = vsyncpa [#allocation20], 1 }
0x1afe   :  { %2729 = vsyncpa [#allocation6], 1 }
0x1aff   :  { %2730 = vsyncpa [#allocation8], 1 }

</bundles_post_ra>
